<compile_context>
chip_gen: v6e
topology: v6e:2x2x1
jax: 0.10.0
libtpu: 0.0.40
codegen_flags: <defaults>
</compile_context>

<pallas_src>
import jax
import jax.numpy as jnp
from jax.experimental import pallas as pl
from jax.experimental.pallas import tpu as pltpu


def _mlp_kernel(x_ref, w1_ref, b1_ref, w2_ref, b2_ref, w3_ref, b3_ref, o_ref):
    # x_ref : (8, sub, 128) f32 VMEM  -- 8 feature planes, batch on (sublane, lane)
    # w*/b* : SMEM scalars, PyTorch layout (out, in) / (out,)
    # o_ref : (sub, 128) f32 VMEM     -- one sigmoid output per batch element

    def sigmoid(z):
        # exp goes to the EUP slot; exact reciprocal to preserve 1e-5 parity.
        return pl.reciprocal(1.0 + jnp.exp(-z), approx=False)

    # Dense (sub, 128) feature planes.
    x = [x_ref[k] for k in range(8)]

    # Layer 1: 8 -> 6 (unrolled VPU MACs; MXU would be >95% zero padding).
    h1 = []
    for j in range(6):
        acc = x[0] * w1_ref[j, 0]
        for k in range(1, 8):
            acc = acc + x[k] * w1_ref[j, k]
        h1.append(sigmoid(acc + b1_ref[j]))

    # Layer 2: 6 -> 4
    h2 = []
    for j in range(4):
        acc = h1[0] * w2_ref[j, 0]
        for k in range(1, 6):
            acc = acc + h1[k] * w2_ref[j, k]
        h2.append(sigmoid(acc + b2_ref[j]))

    # Layer 3: 4 -> 1
    acc = h2[0] * w3_ref[0, 0]
    for k in range(1, 4):
        acc = acc + h2[k] * w3_ref[0, k]
    o_ref[...] = sigmoid(acc + b3_ref[0])


def mlp_forward(x, w1, b1, w2, b2, w3, b3, *, rows_per_tile=4096):
    """x: (N, 8) f32. Weights in PyTorch layout: w (out, in), b (out,)."""
    n, d_in = x.shape
    assert d_in == 8
    lanes = 128

    # --- lane-dense layout plumbing (outside the kernel) ---
    n_groups = pl.cdiv(n, lanes)                 # number of 128-wide batch groups
    max_sub = max(1, rows_per_tile // lanes)     # sublane-groups per grid tile
    sub = min(max_sub, n_groups)
    if sub < n_groups:
        sub = max(8, (sub // 8) * 8)             # (8,128) tiling rule for the block
        if sub >= n_groups:
            sub = n_groups
    n_pad = n_groups * lanes
    grid = (pl.cdiv(n_groups, sub),)

    x_pad = x if n_pad == n else jnp.pad(x, ((0, n_pad - n), (0, 0)))
    x_t = x_pad.T.reshape(8, n_groups, lanes)    # (8, N/128, 128) feature planes

    smem = pltpu.MemorySpace.SMEM
    out = pl.pallas_call(
        _mlp_kernel,
        out_shape=jax.ShapeDtypeStruct((n_groups, lanes), jnp.float32),
        grid=grid,
        in_specs=[
            # batch-tiled activations (double-buffered by the Pallas pipeline)
            pl.BlockSpec((8, sub, lanes), lambda i: (0, i, 0)),
            # grid-invariant scalar params, resident in SMEM (fetched once)
            pl.BlockSpec((6, 8), lambda i: (0, 0), memory_space=smem),
            pl.BlockSpec((6,), lambda i: (0,), memory_space=smem),
            pl.BlockSpec((4, 6), lambda i: (0, 0), memory_space=smem),
            pl.BlockSpec((4,), lambda i: (0,), memory_space=smem),
            pl.BlockSpec((1, 4), lambda i: (0, 0), memory_space=smem),
            pl.BlockSpec((1,), lambda i: (0,), memory_space=smem),
        ],
        out_specs=pl.BlockSpec((sub, lanes), lambda i: (i, 0)),
        compiler_params=pltpu.CompilerParams(
            dimension_semantics=("parallel",)),   # lets v7x shard tiles over 2 TCs
    )(x_t, w1, b1, w2, b2, w3, b3)

    # back to PyTorch's (N, 1) layout; padded tail rows are dropped
    return out.reshape(n_pad, 1)[:n]


def init_params(key):
    """Shapes mirror torch.nn.Linear: weight (out, in), bias (out,)."""
    ks = jax.random.split(key, 6)

    def uniform(k, shape, fan_in):
        bound = 1.0 / (fan_in ** 0.5)
        return jax.random.uniform(k, shape, jnp.float32, -bound, bound)

    w1 = uniform(ks[0], (6, 8), 8)
    b1 = uniform(ks[1], (6,), 8)
    w2 = uniform(ks[2], (4, 6), 6)
    b2 = uniform(ks[3], (4,), 6)
    w3 = uniform(ks[4], (1, 4), 4)
    b3 = uniform(ks[5], (1,), 4)
    return w1, b1, w2, b2, w3, b3


if __name__ == "__main__":
    key = jax.random.PRNGKey(0)
    kx, kp = jax.random.split(key)

    N = 2000  # not a multiple of 128 -> exercises padding; 2 grid tiles below
    x = jax.random.normal(kx, (N, 8), jnp.float32)
    params = init_params(kp)

    out = mlp_forward(x, *params, rows_per_tile=1024)
    out = jax.block_until_ready(out)

    # Reference in plain JAX (same math as the PyTorch forward).
    w1, b1, w2, b2, w3, b3 = params
    ref = jax.nn.sigmoid(x @ w1.T + b1)
    ref = jax.nn.sigmoid(ref @ w2.T + b2)
    ref = jax.nn.sigmoid(ref @ w3.T + b3)

    assert out.shape == (N, 1)
    assert jnp.allclose(out, ref, atol=1e-5, rtol=1e-5), float(
        jnp.max(jnp.abs(out - ref)))

    print("KERNEL_OK")
</pallas_src>

<mosaic_0001>
module attributes {stable_mosaic.version = 11 : i64} {
  func.func @_mlp_kernel(%arg0: i32, %arg1: memref<8x8x128xf32, #tpu.memory_space<vmem>>, %arg2: memref<6x8xf32, #tpu.memory_space<smem>>, %arg3: memref<6xf32, #tpu.memory_space<smem>>, %arg4: memref<4x6xf32, #tpu.memory_space<smem>>, %arg5: memref<4xf32, #tpu.memory_space<smem>>, %arg6: memref<1x4xf32, #tpu.memory_space<smem>>, %arg7: memref<1xf32, #tpu.memory_space<smem>>, %arg8: memref<8x128xf32, #tpu.memory_space<vmem>>) attributes {dimension_semantics = [#tpu.dimension_semantics<parallel>], iteration_bounds = array<i64: 2>, scalar_prefetch = 0 : i64, scratch_operands = 0 : i64, tpu.core_type = #tpu.core_type<tc>, window_params = [{transform_indices = @transform_0, window_bounds = array<i64: 8, 8, 128>}, {transform_indices = @transform_1, window_bounds = array<i64: 6, 8>}, {transform_indices = @transform_2, window_bounds = array<i64: 6>}, {transform_indices = @transform_3, window_bounds = array<i64: 4, 6>}, {transform_indices = @transform_4, window_bounds = array<i64: 4>}, {transform_indices = @transform_5, window_bounds = array<i64: 1, 4>}, {transform_indices = @transform_6, window_bounds = array<i64: 1>}, {transform_indices = @transform_7, window_bounds = array<i64: 8, 128>}]} {
    %c0 = arith.constant 0 : index
    %c0_0 = arith.constant 0 : index
    %c0_1 = arith.constant 0 : index
    %0 = vector.load %arg1[%c0, %c0_0, %c0_1] : memref<8x8x128xf32, #tpu.memory_space<vmem>>, vector<1x8x128xf32>
    %1 = vector.shape_cast %0 : vector<1x8x128xf32> to vector<8x128xf32>
    %c1 = arith.constant 1 : index
    %c0_2 = arith.constant 0 : index
    %c0_3 = arith.constant 0 : index
    %2 = vector.load %arg1[%c1, %c0_2, %c0_3] : memref<8x8x128xf32, #tpu.memory_space<vmem>>, vector<1x8x128xf32>
    %3 = vector.shape_cast %2 : vector<1x8x128xf32> to vector<8x128xf32>
    %c2 = arith.constant 2 : index
    %c0_4 = arith.constant 0 : index
    %c0_5 = arith.constant 0 : index
    %4 = vector.load %arg1[%c2, %c0_4, %c0_5] : memref<8x8x128xf32, #tpu.memory_space<vmem>>, vector<1x8x128xf32>
    %5 = vector.shape_cast %4 : vector<1x8x128xf32> to vector<8x128xf32>
    %c3 = arith.constant 3 : index
    %c0_6 = arith.constant 0 : index
    %c0_7 = arith.constant 0 : index
    %6 = vector.load %arg1[%c3, %c0_6, %c0_7] : memref<8x8x128xf32, #tpu.memory_space<vmem>>, vector<1x8x128xf32>
    %7 = vector.shape_cast %6 : vector<1x8x128xf32> to vector<8x128xf32>
    %c4 = arith.constant 4 : index
    %c0_8 = arith.constant 0 : index
    %c0_9 = arith.constant 0 : index
    %8 = vector.load %arg1[%c4, %c0_8, %c0_9] : memref<8x8x128xf32, #tpu.memory_space<vmem>>, vector<1x8x128xf32>
    %9 = vector.shape_cast %8 : vector<1x8x128xf32> to vector<8x128xf32>
    %c5 = arith.constant 5 : index
    %c0_10 = arith.constant 0 : index
    %c0_11 = arith.constant 0 : index
    %10 = vector.load %arg1[%c5, %c0_10, %c0_11] : memref<8x8x128xf32, #tpu.memory_space<vmem>>, vector<1x8x128xf32>
    %11 = vector.shape_cast %10 : vector<1x8x128xf32> to vector<8x128xf32>
    %c6 = arith.constant 6 : index
    %c0_12 = arith.constant 0 : index
    %c0_13 = arith.constant 0 : index
    %12 = vector.load %arg1[%c6, %c0_12, %c0_13] : memref<8x8x128xf32, #tpu.memory_space<vmem>>, vector<1x8x128xf32>
    %13 = vector.shape_cast %12 : vector<1x8x128xf32> to vector<8x128xf32>
    %c7 = arith.constant 7 : index
    %c0_14 = arith.constant 0 : index
    %c0_15 = arith.constant 0 : index
    %14 = vector.load %arg1[%c7, %c0_14, %c0_15] : memref<8x8x128xf32, #tpu.memory_space<vmem>>, vector<1x8x128xf32>
    %15 = vector.shape_cast %14 : vector<1x8x128xf32> to vector<8x128xf32>
    %c0_16 = arith.constant 0 : index
    %c0_17 = arith.constant 0 : index
    %16 = memref.load %arg2[%c0_16, %c0_17] : memref<6x8xf32, #tpu.memory_space<smem>>
    %17 = vector.broadcast %16 : f32 to vector<8x128xf32>
    %18 = arith.mulf %1, %17 : vector<8x128xf32>
    %c0_18 = arith.constant 0 : index
    %c1_19 = arith.constant 1 : index
    %19 = memref.load %arg2[%c0_18, %c1_19] : memref<6x8xf32, #tpu.memory_space<smem>>
    %20 = vector.broadcast %19 : f32 to vector<8x128xf32>
    %21 = arith.mulf %3, %20 : vector<8x128xf32>
    %22 = arith.addf %18, %21 : vector<8x128xf32>
    %c0_20 = arith.constant 0 : index
    %c2_21 = arith.constant 2 : index
    %23 = memref.load %arg2[%c0_20, %c2_21] : memref<6x8xf32, #tpu.memory_space<smem>>
    %24 = vector.broadcast %23 : f32 to vector<8x128xf32>
    %25 = arith.mulf %5, %24 : vector<8x128xf32>
    %26 = arith.addf %22, %25 : vector<8x128xf32>
    %c0_22 = arith.constant 0 : index
    %c3_23 = arith.constant 3 : index
    %27 = memref.load %arg2[%c0_22, %c3_23] : memref<6x8xf32, #tpu.memory_space<smem>>
    %28 = vector.broadcast %27 : f32 to vector<8x128xf32>
    %29 = arith.mulf %7, %28 : vector<8x128xf32>
    %30 = arith.addf %26, %29 : vector<8x128xf32>
    %c0_24 = arith.constant 0 : index
    %c4_25 = arith.constant 4 : index
    %31 = memref.load %arg2[%c0_24, %c4_25] : memref<6x8xf32, #tpu.memory_space<smem>>
    %32 = vector.broadcast %31 : f32 to vector<8x128xf32>
    %33 = arith.mulf %9, %32 : vector<8x128xf32>
    %34 = arith.addf %30, %33 : vector<8x128xf32>
    %c0_26 = arith.constant 0 : index
    %c5_27 = arith.constant 5 : index
    %35 = memref.load %arg2[%c0_26, %c5_27] : memref<6x8xf32, #tpu.memory_space<smem>>
    %36 = vector.broadcast %35 : f32 to vector<8x128xf32>
    %37 = arith.mulf %11, %36 : vector<8x128xf32>
    %38 = arith.addf %34, %37 : vector<8x128xf32>
    %c0_28 = arith.constant 0 : index
    %c6_29 = arith.constant 6 : index
    %39 = memref.load %arg2[%c0_28, %c6_29] : memref<6x8xf32, #tpu.memory_space<smem>>
    %40 = vector.broadcast %39 : f32 to vector<8x128xf32>
    %41 = arith.mulf %13, %40 : vector<8x128xf32>
    %42 = arith.addf %38, %41 : vector<8x128xf32>
    %c0_30 = arith.constant 0 : index
    %c7_31 = arith.constant 7 : index
    %43 = memref.load %arg2[%c0_30, %c7_31] : memref<6x8xf32, #tpu.memory_space<smem>>
    %44 = vector.broadcast %43 : f32 to vector<8x128xf32>
    %45 = arith.mulf %15, %44 : vector<8x128xf32>
    %46 = arith.addf %42, %45 : vector<8x128xf32>
    %c0_32 = arith.constant 0 : index
    %47 = memref.load %arg3[%c0_32] : memref<6xf32, #tpu.memory_space<smem>>
    %48 = vector.broadcast %47 : f32 to vector<8x128xf32>
    %49 = arith.addf %46, %48 : vector<8x128xf32>
    %cst = arith.constant 0.000000e+00 : f32
    %50 = vector.broadcast %cst : f32 to vector<8x128xf32>
    %51 = arith.subf %50, %49 : vector<8x128xf32>
    %52 = math.exp %51 : vector<8x128xf32>
    %cst_33 = arith.constant 1.000000e+00 : f32
    %53 = vector.broadcast %cst_33 : f32 to vector<8x128xf32>
    %54 = arith.addf %53, %52 : vector<8x128xf32>
    %55 = tpu.reciprocal %54 : vector<8x128xf32> -> vector<8x128xf32>
    %c1_34 = arith.constant 1 : index
    %c0_35 = arith.constant 0 : index
    %56 = memref.load %arg2[%c1_34, %c0_35] : memref<6x8xf32, #tpu.memory_space<smem>>
    %57 = vector.broadcast %56 : f32 to vector<8x128xf32>
    %58 = arith.mulf %1, %57 : vector<8x128xf32>
    %c1_36 = arith.constant 1 : index
    %c1_37 = arith.constant 1 : index
    %59 = memref.load %arg2[%c1_36, %c1_37] : memref<6x8xf32, #tpu.memory_space<smem>>
    %60 = vector.broadcast %59 : f32 to vector<8x128xf32>
    %61 = arith.mulf %3, %60 : vector<8x128xf32>
    %62 = arith.addf %58, %61 : vector<8x128xf32>
    %c1_38 = arith.constant 1 : index
    %c2_39 = arith.constant 2 : index
    %63 = memref.load %arg2[%c1_38, %c2_39] : memref<6x8xf32, #tpu.memory_space<smem>>
    %64 = vector.broadcast %63 : f32 to vector<8x128xf32>
    %65 = arith.mulf %5, %64 : vector<8x128xf32>
    %66 = arith.addf %62, %65 : vector<8x128xf32>
    %c1_40 = arith.constant 1 : index
    %c3_41 = arith.constant 3 : index
    %67 = memref.load %arg2[%c1_40, %c3_41] : memref<6x8xf32, #tpu.memory_space<smem>>
    %68 = vector.broadcast %67 : f32 to vector<8x128xf32>
    %69 = arith.mulf %7, %68 : vector<8x128xf32>
    %70 = arith.addf %66, %69 : vector<8x128xf32>
    %c1_42 = arith.constant 1 : index
    %c4_43 = arith.constant 4 : index
    %71 = memref.load %arg2[%c1_42, %c4_43] : memref<6x8xf32, #tpu.memory_space<smem>>
    %72 = vector.broadcast %71 : f32 to vector<8x128xf32>
    %73 = arith.mulf %9, %72 : vector<8x128xf32>
    %74 = arith.addf %70, %73 : vector<8x128xf32>
    %c1_44 = arith.constant 1 : index
    %c5_45 = arith.constant 5 : index
    %75 = memref.load %arg2[%c1_44, %c5_45] : memref<6x8xf32, #tpu.memory_space<smem>>
    %76 = vector.broadcast %75 : f32 to vector<8x128xf32>
    %77 = arith.mulf %11, %76 : vector<8x128xf32>
    %78 = arith.addf %74, %77 : vector<8x128xf32>
    %c1_46 = arith.constant 1 : index
    %c6_47 = arith.constant 6 : index
    %79 = memref.load %arg2[%c1_46, %c6_47] : memref<6x8xf32, #tpu.memory_space<smem>>
    %80 = vector.broadcast %79 : f32 to vector<8x128xf32>
    %81 = arith.mulf %13, %80 : vector<8x128xf32>
    %82 = arith.addf %78, %81 : vector<8x128xf32>
    %c1_48 = arith.constant 1 : index
    %c7_49 = arith.constant 7 : index
    %83 = memref.load %arg2[%c1_48, %c7_49] : memref<6x8xf32, #tpu.memory_space<smem>>
    %84 = vector.broadcast %83 : f32 to vector<8x128xf32>
    %85 = arith.mulf %15, %84 : vector<8x128xf32>
    %86 = arith.addf %82, %85 : vector<8x128xf32>
    %c1_50 = arith.constant 1 : index
    %87 = memref.load %arg3[%c1_50] : memref<6xf32, #tpu.memory_space<smem>>
    %88 = vector.broadcast %87 : f32 to vector<8x128xf32>
    %89 = arith.addf %86, %88 : vector<8x128xf32>
    %cst_51 = arith.constant 0.000000e+00 : f32
    %90 = vector.broadcast %cst_51 : f32 to vector<8x128xf32>
    %91 = arith.subf %90, %89 : vector<8x128xf32>
    %92 = math.exp %91 : vector<8x128xf32>
    %cst_52 = arith.constant 1.000000e+00 : f32
    %93 = vector.broadcast %cst_52 : f32 to vector<8x128xf32>
    %94 = arith.addf %93, %92 : vector<8x128xf32>
    %95 = tpu.reciprocal %94 : vector<8x128xf32> -> vector<8x128xf32>
    %c2_53 = arith.constant 2 : index
    %c0_54 = arith.constant 0 : index
    %96 = memref.load %arg2[%c2_53, %c0_54] : memref<6x8xf32, #tpu.memory_space<smem>>
    %97 = vector.broadcast %96 : f32 to vector<8x128xf32>
    %98 = arith.mulf %1, %97 : vector<8x128xf32>
    %c2_55 = arith.constant 2 : index
    %c1_56 = arith.constant 1 : index
    %99 = memref.load %arg2[%c2_55, %c1_56] : memref<6x8xf32, #tpu.memory_space<smem>>
    %100 = vector.broadcast %99 : f32 to vector<8x128xf32>
    %101 = arith.mulf %3, %100 : vector<8x128xf32>
    %102 = arith.addf %98, %101 : vector<8x128xf32>
    %c2_57 = arith.constant 2 : index
    %c2_58 = arith.constant 2 : index
    %103 = memref.load %arg2[%c2_57, %c2_58] : memref<6x8xf32, #tpu.memory_space<smem>>
    %104 = vector.broadcast %103 : f32 to vector<8x128xf32>
    %105 = arith.mulf %5, %104 : vector<8x128xf32>
    %106 = arith.addf %102, %105 : vector<8x128xf32>
    %c2_59 = arith.constant 2 : index
    %c3_60 = arith.constant 3 : index
    %107 = memref.load %arg2[%c2_59, %c3_60] : memref<6x8xf32, #tpu.memory_space<smem>>
    %108 = vector.broadcast %107 : f32 to vector<8x128xf32>
    %109 = arith.mulf %7, %108 : vector<8x128xf32>
    %110 = arith.addf %106, %109 : vector<8x128xf32>
    %c2_61 = arith.constant 2 : index
    %c4_62 = arith.constant 4 : index
    %111 = memref.load %arg2[%c2_61, %c4_62] : memref<6x8xf32, #tpu.memory_space<smem>>
    %112 = vector.broadcast %111 : f32 to vector<8x128xf32>
    %113 = arith.mulf %9, %112 : vector<8x128xf32>
    %114 = arith.addf %110, %113 : vector<8x128xf32>
    %c2_63 = arith.constant 2 : index
    %c5_64 = arith.constant 5 : index
    %115 = memref.load %arg2[%c2_63, %c5_64] : memref<6x8xf32, #tpu.memory_space<smem>>
    %116 = vector.broadcast %115 : f32 to vector<8x128xf32>
    %117 = arith.mulf %11, %116 : vector<8x128xf32>
    %118 = arith.addf %114, %117 : vector<8x128xf32>
    %c2_65 = arith.constant 2 : index
    %c6_66 = arith.constant 6 : index
    %119 = memref.load %arg2[%c2_65, %c6_66] : memref<6x8xf32, #tpu.memory_space<smem>>
    %120 = vector.broadcast %119 : f32 to vector<8x128xf32>
    %121 = arith.mulf %13, %120 : vector<8x128xf32>
    %122 = arith.addf %118, %121 : vector<8x128xf32>
    %c2_67 = arith.constant 2 : index
    %c7_68 = arith.constant 7 : index
    %123 = memref.load %arg2[%c2_67, %c7_68] : memref<6x8xf32, #tpu.memory_space<smem>>
    %124 = vector.broadcast %123 : f32 to vector<8x128xf32>
    %125 = arith.mulf %15, %124 : vector<8x128xf32>
    %126 = arith.addf %122, %125 : vector<8x128xf32>
    %c2_69 = arith.constant 2 : index
    %127 = memref.load %arg3[%c2_69] : memref<6xf32, #tpu.memory_space<smem>>
    %128 = vector.broadcast %127 : f32 to vector<8x128xf32>
    %129 = arith.addf %126, %128 : vector<8x128xf32>
    %cst_70 = arith.constant 0.000000e+00 : f32
    %130 = vector.broadcast %cst_70 : f32 to vector<8x128xf32>
    %131 = arith.subf %130, %129 : vector<8x128xf32>
    %132 = math.exp %131 : vector<8x128xf32>
    %cst_71 = arith.constant 1.000000e+00 : f32
    %133 = vector.broadcast %cst_71 : f32 to vector<8x128xf32>
    %134 = arith.addf %133, %132 : vector<8x128xf32>
    %135 = tpu.reciprocal %134 : vector<8x128xf32> -> vector<8x128xf32>
    %c3_72 = arith.constant 3 : index
    %c0_73 = arith.constant 0 : index
    %136 = memref.load %arg2[%c3_72, %c0_73] : memref<6x8xf32, #tpu.memory_space<smem>>
    %137 = vector.broadcast %136 : f32 to vector<8x128xf32>
    %138 = arith.mulf %1, %137 : vector<8x128xf32>
    %c3_74 = arith.constant 3 : index
    %c1_75 = arith.constant 1 : index
    %139 = memref.load %arg2[%c3_74, %c1_75] : memref<6x8xf32, #tpu.memory_space<smem>>
    %140 = vector.broadcast %139 : f32 to vector<8x128xf32>
    %141 = arith.mulf %3, %140 : vector<8x128xf32>
    %142 = arith.addf %138, %141 : vector<8x128xf32>
    %c3_76 = arith.constant 3 : index
    %c2_77 = arith.constant 2 : index
    %143 = memref.load %arg2[%c3_76, %c2_77] : memref<6x8xf32, #tpu.memory_space<smem>>
    %144 = vector.broadcast %143 : f32 to vector<8x128xf32>
    %145 = arith.mulf %5, %144 : vector<8x128xf32>
    %146 = arith.addf %142, %145 : vector<8x128xf32>
    %c3_78 = arith.constant 3 : index
    %c3_79 = arith.constant 3 : index
    %147 = memref.load %arg2[%c3_78, %c3_79] : memref<6x8xf32, #tpu.memory_space<smem>>
    %148 = vector.broadcast %147 : f32 to vector<8x128xf32>
    %149 = arith.mulf %7, %148 : vector<8x128xf32>
    %150 = arith.addf %146, %149 : vector<8x128xf32>
    %c3_80 = arith.constant 3 : index
    %c4_81 = arith.constant 4 : index
    %151 = memref.load %arg2[%c3_80, %c4_81] : memref<6x8xf32, #tpu.memory_space<smem>>
    %152 = vector.broadcast %151 : f32 to vector<8x128xf32>
    %153 = arith.mulf %9, %152 : vector<8x128xf32>
    %154 = arith.addf %150, %153 : vector<8x128xf32>
    %c3_82 = arith.constant 3 : index
    %c5_83 = arith.constant 5 : index
    %155 = memref.load %arg2[%c3_82, %c5_83] : memref<6x8xf32, #tpu.memory_space<smem>>
    %156 = vector.broadcast %155 : f32 to vector<8x128xf32>
    %157 = arith.mulf %11, %156 : vector<8x128xf32>
    %158 = arith.addf %154, %157 : vector<8x128xf32>
    %c3_84 = arith.constant 3 : index
    %c6_85 = arith.constant 6 : index
    %159 = memref.load %arg2[%c3_84, %c6_85] : memref<6x8xf32, #tpu.memory_space<smem>>
    %160 = vector.broadcast %159 : f32 to vector<8x128xf32>
    %161 = arith.mulf %13, %160 : vector<8x128xf32>
    %162 = arith.addf %158, %161 : vector<8x128xf32>
    %c3_86 = arith.constant 3 : index
    %c7_87 = arith.constant 7 : index
    %163 = memref.load %arg2[%c3_86, %c7_87] : memref<6x8xf32, #tpu.memory_space<smem>>
    %164 = vector.broadcast %163 : f32 to vector<8x128xf32>
    %165 = arith.mulf %15, %164 : vector<8x128xf32>
    %166 = arith.addf %162, %165 : vector<8x128xf32>
    %c3_88 = arith.constant 3 : index
    %167 = memref.load %arg3[%c3_88] : memref<6xf32, #tpu.memory_space<smem>>
    %168 = vector.broadcast %167 : f32 to vector<8x128xf32>
    %169 = arith.addf %166, %168 : vector<8x128xf32>
    %cst_89 = arith.constant 0.000000e+00 : f32
    %170 = vector.broadcast %cst_89 : f32 to vector<8x128xf32>
    %171 = arith.subf %170, %169 : vector<8x128xf32>
    %172 = math.exp %171 : vector<8x128xf32>
    %cst_90 = arith.constant 1.000000e+00 : f32
    %173 = vector.broadcast %cst_90 : f32 to vector<8x128xf32>
    %174 = arith.addf %173, %172 : vector<8x128xf32>
    %175 = tpu.reciprocal %174 : vector<8x128xf32> -> vector<8x128xf32>
    %c4_91 = arith.constant 4 : index
    %c0_92 = arith.constant 0 : index
    %176 = memref.load %arg2[%c4_91, %c0_92] : memref<6x8xf32, #tpu.memory_space<smem>>
    %177 = vector.broadcast %176 : f32 to vector<8x128xf32>
    %178 = arith.mulf %1, %177 : vector<8x128xf32>
    %c4_93 = arith.constant 4 : index
    %c1_94 = arith.constant 1 : index
    %179 = memref.load %arg2[%c4_93, %c1_94] : memref<6x8xf32, #tpu.memory_space<smem>>
    %180 = vector.broadcast %179 : f32 to vector<8x128xf32>
    %181 = arith.mulf %3, %180 : vector<8x128xf32>
    %182 = arith.addf %178, %181 : vector<8x128xf32>
    %c4_95 = arith.constant 4 : index
    %c2_96 = arith.constant 2 : index
    %183 = memref.load %arg2[%c4_95, %c2_96] : memref<6x8xf32, #tpu.memory_space<smem>>
    %184 = vector.broadcast %183 : f32 to vector<8x128xf32>
    %185 = arith.mulf %5, %184 : vector<8x128xf32>
    %186 = arith.addf %182, %185 : vector<8x128xf32>
    %c4_97 = arith.constant 4 : index
    %c3_98 = arith.constant 3 : index
    %187 = memref.load %arg2[%c4_97, %c3_98] : memref<6x8xf32, #tpu.memory_space<smem>>
    %188 = vector.broadcast %187 : f32 to vector<8x128xf32>
    %189 = arith.mulf %7, %188 : vector<8x128xf32>
    %190 = arith.addf %186, %189 : vector<8x128xf32>
    %c4_99 = arith.constant 4 : index
    %c4_100 = arith.constant 4 : index
    %191 = memref.load %arg2[%c4_99, %c4_100] : memref<6x8xf32, #tpu.memory_space<smem>>
    %192 = vector.broadcast %191 : f32 to vector<8x128xf32>
    %193 = arith.mulf %9, %192 : vector<8x128xf32>
    %194 = arith.addf %190, %193 : vector<8x128xf32>
    %c4_101 = arith.constant 4 : index
    %c5_102 = arith.constant 5 : index
    %195 = memref.load %arg2[%c4_101, %c5_102] : memref<6x8xf32, #tpu.memory_space<smem>>
    %196 = vector.broadcast %195 : f32 to vector<8x128xf32>
    %197 = arith.mulf %11, %196 : vector<8x128xf32>
    %198 = arith.addf %194, %197 : vector<8x128xf32>
    %c4_103 = arith.constant 4 : index
    %c6_104 = arith.constant 6 : index
    %199 = memref.load %arg2[%c4_103, %c6_104] : memref<6x8xf32, #tpu.memory_space<smem>>
    %200 = vector.broadcast %199 : f32 to vector<8x128xf32>
    %201 = arith.mulf %13, %200 : vector<8x128xf32>
    %202 = arith.addf %198, %201 : vector<8x128xf32>
    %c4_105 = arith.constant 4 : index
    %c7_106 = arith.constant 7 : index
    %203 = memref.load %arg2[%c4_105, %c7_106] : memref<6x8xf32, #tpu.memory_space<smem>>
    %204 = vector.broadcast %203 : f32 to vector<8x128xf32>
    %205 = arith.mulf %15, %204 : vector<8x128xf32>
    %206 = arith.addf %202, %205 : vector<8x128xf32>
    %c4_107 = arith.constant 4 : index
    %207 = memref.load %arg3[%c4_107] : memref<6xf32, #tpu.memory_space<smem>>
    %208 = vector.broadcast %207 : f32 to vector<8x128xf32>
    %209 = arith.addf %206, %208 : vector<8x128xf32>
    %cst_108 = arith.constant 0.000000e+00 : f32
    %210 = vector.broadcast %cst_108 : f32 to vector<8x128xf32>
    %211 = arith.subf %210, %209 : vector<8x128xf32>
    %212 = math.exp %211 : vector<8x128xf32>
    %cst_109 = arith.constant 1.000000e+00 : f32
    %213 = vector.broadcast %cst_109 : f32 to vector<8x128xf32>
    %214 = arith.addf %213, %212 : vector<8x128xf32>
    %215 = tpu.reciprocal %214 : vector<8x128xf32> -> vector<8x128xf32>
    %c5_110 = arith.constant 5 : index
    %c0_111 = arith.constant 0 : index
    %216 = memref.load %arg2[%c5_110, %c0_111] : memref<6x8xf32, #tpu.memory_space<smem>>
    %217 = vector.broadcast %216 : f32 to vector<8x128xf32>
    %218 = arith.mulf %1, %217 : vector<8x128xf32>
    %c5_112 = arith.constant 5 : index
    %c1_113 = arith.constant 1 : index
    %219 = memref.load %arg2[%c5_112, %c1_113] : memref<6x8xf32, #tpu.memory_space<smem>>
    %220 = vector.broadcast %219 : f32 to vector<8x128xf32>
    %221 = arith.mulf %3, %220 : vector<8x128xf32>
    %222 = arith.addf %218, %221 : vector<8x128xf32>
    %c5_114 = arith.constant 5 : index
    %c2_115 = arith.constant 2 : index
    %223 = memref.load %arg2[%c5_114, %c2_115] : memref<6x8xf32, #tpu.memory_space<smem>>
    %224 = vector.broadcast %223 : f32 to vector<8x128xf32>
    %225 = arith.mulf %5, %224 : vector<8x128xf32>
    %226 = arith.addf %222, %225 : vector<8x128xf32>
    %c5_116 = arith.constant 5 : index
    %c3_117 = arith.constant 3 : index
    %227 = memref.load %arg2[%c5_116, %c3_117] : memref<6x8xf32, #tpu.memory_space<smem>>
    %228 = vector.broadcast %227 : f32 to vector<8x128xf32>
    %229 = arith.mulf %7, %228 : vector<8x128xf32>
    %230 = arith.addf %226, %229 : vector<8x128xf32>
    %c5_118 = arith.constant 5 : index
    %c4_119 = arith.constant 4 : index
    %231 = memref.load %arg2[%c5_118, %c4_119] : memref<6x8xf32, #tpu.memory_space<smem>>
    %232 = vector.broadcast %231 : f32 to vector<8x128xf32>
    %233 = arith.mulf %9, %232 : vector<8x128xf32>
    %234 = arith.addf %230, %233 : vector<8x128xf32>
    %c5_120 = arith.constant 5 : index
    %c5_121 = arith.constant 5 : index
    %235 = memref.load %arg2[%c5_120, %c5_121] : memref<6x8xf32, #tpu.memory_space<smem>>
    %236 = vector.broadcast %235 : f32 to vector<8x128xf32>
    %237 = arith.mulf %11, %236 : vector<8x128xf32>
    %238 = arith.addf %234, %237 : vector<8x128xf32>
    %c5_122 = arith.constant 5 : index
    %c6_123 = arith.constant 6 : index
    %239 = memref.load %arg2[%c5_122, %c6_123] : memref<6x8xf32, #tpu.memory_space<smem>>
    %240 = vector.broadcast %239 : f32 to vector<8x128xf32>
    %241 = arith.mulf %13, %240 : vector<8x128xf32>
    %242 = arith.addf %238, %241 : vector<8x128xf32>
    %c5_124 = arith.constant 5 : index
    %c7_125 = arith.constant 7 : index
    %243 = memref.load %arg2[%c5_124, %c7_125] : memref<6x8xf32, #tpu.memory_space<smem>>
    %244 = vector.broadcast %243 : f32 to vector<8x128xf32>
    %245 = arith.mulf %15, %244 : vector<8x128xf32>
    %246 = arith.addf %242, %245 : vector<8x128xf32>
    %c5_126 = arith.constant 5 : index
    %247 = memref.load %arg3[%c5_126] : memref<6xf32, #tpu.memory_space<smem>>
    %248 = vector.broadcast %247 : f32 to vector<8x128xf32>
    %249 = arith.addf %246, %248 : vector<8x128xf32>
    %cst_127 = arith.constant 0.000000e+00 : f32
    %250 = vector.broadcast %cst_127 : f32 to vector<8x128xf32>
    %251 = arith.subf %250, %249 : vector<8x128xf32>
    %252 = math.exp %251 : vector<8x128xf32>
    %cst_128 = arith.constant 1.000000e+00 : f32
    %253 = vector.broadcast %cst_128 : f32 to vector<8x128xf32>
    %254 = arith.addf %253, %252 : vector<8x128xf32>
    %255 = tpu.reciprocal %254 : vector<8x128xf32> -> vector<8x128xf32>
    %c0_129 = arith.constant 0 : index
    %c0_130 = arith.constant 0 : index
    %256 = memref.load %arg4[%c0_129, %c0_130] : memref<4x6xf32, #tpu.memory_space<smem>>
    %257 = vector.broadcast %256 : f32 to vector<8x128xf32>
    %258 = arith.mulf %55, %257 : vector<8x128xf32>
    %c0_131 = arith.constant 0 : index
    %c1_132 = arith.constant 1 : index
    %259 = memref.load %arg4[%c0_131, %c1_132] : memref<4x6xf32, #tpu.memory_space<smem>>
    %260 = vector.broadcast %259 : f32 to vector<8x128xf32>
    %261 = arith.mulf %95, %260 : vector<8x128xf32>
    %262 = arith.addf %258, %261 : vector<8x128xf32>
    %c0_133 = arith.constant 0 : index
    %c2_134 = arith.constant 2 : index
    %263 = memref.load %arg4[%c0_133, %c2_134] : memref<4x6xf32, #tpu.memory_space<smem>>
    %264 = vector.broadcast %263 : f32 to vector<8x128xf32>
    %265 = arith.mulf %135, %264 : vector<8x128xf32>
    %266 = arith.addf %262, %265 : vector<8x128xf32>
    %c0_135 = arith.constant 0 : index
    %c3_136 = arith.constant 3 : index
    %267 = memref.load %arg4[%c0_135, %c3_136] : memref<4x6xf32, #tpu.memory_space<smem>>
    %268 = vector.broadcast %267 : f32 to vector<8x128xf32>
    %269 = arith.mulf %175, %268 : vector<8x128xf32>
    %270 = arith.addf %266, %269 : vector<8x128xf32>
    %c0_137 = arith.constant 0 : index
    %c4_138 = arith.constant 4 : index
    %271 = memref.load %arg4[%c0_137, %c4_138] : memref<4x6xf32, #tpu.memory_space<smem>>
    %272 = vector.broadcast %271 : f32 to vector<8x128xf32>
    %273 = arith.mulf %215, %272 : vector<8x128xf32>
    %274 = arith.addf %270, %273 : vector<8x128xf32>
    %c0_139 = arith.constant 0 : index
    %c5_140 = arith.constant 5 : index
    %275 = memref.load %arg4[%c0_139, %c5_140] : memref<4x6xf32, #tpu.memory_space<smem>>
    %276 = vector.broadcast %275 : f32 to vector<8x128xf32>
    %277 = arith.mulf %255, %276 : vector<8x128xf32>
    %278 = arith.addf %274, %277 : vector<8x128xf32>
    %c0_141 = arith.constant 0 : index
    %279 = memref.load %arg5[%c0_141] : memref<4xf32, #tpu.memory_space<smem>>
    %280 = vector.broadcast %279 : f32 to vector<8x128xf32>
    %281 = arith.addf %278, %280 : vector<8x128xf32>
    %cst_142 = arith.constant 0.000000e+00 : f32
    %282 = vector.broadcast %cst_142 : f32 to vector<8x128xf32>
    %283 = arith.subf %282, %281 : vector<8x128xf32>
    %284 = math.exp %283 : vector<8x128xf32>
    %cst_143 = arith.constant 1.000000e+00 : f32
    %285 = vector.broadcast %cst_143 : f32 to vector<8x128xf32>
    %286 = arith.addf %285, %284 : vector<8x128xf32>
    %287 = tpu.reciprocal %286 : vector<8x128xf32> -> vector<8x128xf32>
    %c1_144 = arith.constant 1 : index
    %c0_145 = arith.constant 0 : index
    %288 = memref.load %arg4[%c1_144, %c0_145] : memref<4x6xf32, #tpu.memory_space<smem>>
    %289 = vector.broadcast %288 : f32 to vector<8x128xf32>
    %290 = arith.mulf %55, %289 : vector<8x128xf32>
    %c1_146 = arith.constant 1 : index
    %c1_147 = arith.constant 1 : index
    %291 = memref.load %arg4[%c1_146, %c1_147] : memref<4x6xf32, #tpu.memory_space<smem>>
    %292 = vector.broadcast %291 : f32 to vector<8x128xf32>
    %293 = arith.mulf %95, %292 : vector<8x128xf32>
    %294 = arith.addf %290, %293 : vector<8x128xf32>
    %c1_148 = arith.constant 1 : index
    %c2_149 = arith.constant 2 : index
    %295 = memref.load %arg4[%c1_148, %c2_149] : memref<4x6xf32, #tpu.memory_space<smem>>
    %296 = vector.broadcast %295 : f32 to vector<8x128xf32>
    %297 = arith.mulf %135, %296 : vector<8x128xf32>
    %298 = arith.addf %294, %297 : vector<8x128xf32>
    %c1_150 = arith.constant 1 : index
    %c3_151 = arith.constant 3 : index
    %299 = memref.load %arg4[%c1_150, %c3_151] : memref<4x6xf32, #tpu.memory_space<smem>>
    %300 = vector.broadcast %299 : f32 to vector<8x128xf32>
    %301 = arith.mulf %175, %300 : vector<8x128xf32>
    %302 = arith.addf %298, %301 : vector<8x128xf32>
    %c1_152 = arith.constant 1 : index
    %c4_153 = arith.constant 4 : index
    %303 = memref.load %arg4[%c1_152, %c4_153] : memref<4x6xf32, #tpu.memory_space<smem>>
    %304 = vector.broadcast %303 : f32 to vector<8x128xf32>
    %305 = arith.mulf %215, %304 : vector<8x128xf32>
    %306 = arith.addf %302, %305 : vector<8x128xf32>
    %c1_154 = arith.constant 1 : index
    %c5_155 = arith.constant 5 : index
    %307 = memref.load %arg4[%c1_154, %c5_155] : memref<4x6xf32, #tpu.memory_space<smem>>
    %308 = vector.broadcast %307 : f32 to vector<8x128xf32>
    %309 = arith.mulf %255, %308 : vector<8x128xf32>
    %310 = arith.addf %306, %309 : vector<8x128xf32>
    %c1_156 = arith.constant 1 : index
    %311 = memref.load %arg5[%c1_156] : memref<4xf32, #tpu.memory_space<smem>>
    %312 = vector.broadcast %311 : f32 to vector<8x128xf32>
    %313 = arith.addf %310, %312 : vector<8x128xf32>
    %cst_157 = arith.constant 0.000000e+00 : f32
    %314 = vector.broadcast %cst_157 : f32 to vector<8x128xf32>
    %315 = arith.subf %314, %313 : vector<8x128xf32>
    %316 = math.exp %315 : vector<8x128xf32>
    %cst_158 = arith.constant 1.000000e+00 : f32
    %317 = vector.broadcast %cst_158 : f32 to vector<8x128xf32>
    %318 = arith.addf %317, %316 : vector<8x128xf32>
    %319 = tpu.reciprocal %318 : vector<8x128xf32> -> vector<8x128xf32>
    %c2_159 = arith.constant 2 : index
    %c0_160 = arith.constant 0 : index
    %320 = memref.load %arg4[%c2_159, %c0_160] : memref<4x6xf32, #tpu.memory_space<smem>>
    %321 = vector.broadcast %320 : f32 to vector<8x128xf32>
    %322 = arith.mulf %55, %321 : vector<8x128xf32>
    %c2_161 = arith.constant 2 : index
    %c1_162 = arith.constant 1 : index
    %323 = memref.load %arg4[%c2_161, %c1_162] : memref<4x6xf32, #tpu.memory_space<smem>>
    %324 = vector.broadcast %323 : f32 to vector<8x128xf32>
    %325 = arith.mulf %95, %324 : vector<8x128xf32>
    %326 = arith.addf %322, %325 : vector<8x128xf32>
    %c2_163 = arith.constant 2 : index
    %c2_164 = arith.constant 2 : index
    %327 = memref.load %arg4[%c2_163, %c2_164] : memref<4x6xf32, #tpu.memory_space<smem>>
    %328 = vector.broadcast %327 : f32 to vector<8x128xf32>
    %329 = arith.mulf %135, %328 : vector<8x128xf32>
    %330 = arith.addf %326, %329 : vector<8x128xf32>
    %c2_165 = arith.constant 2 : index
    %c3_166 = arith.constant 3 : index
    %331 = memref.load %arg4[%c2_165, %c3_166] : memref<4x6xf32, #tpu.memory_space<smem>>
    %332 = vector.broadcast %331 : f32 to vector<8x128xf32>
    %333 = arith.mulf %175, %332 : vector<8x128xf32>
    %334 = arith.addf %330, %333 : vector<8x128xf32>
    %c2_167 = arith.constant 2 : index
    %c4_168 = arith.constant 4 : index
    %335 = memref.load %arg4[%c2_167, %c4_168] : memref<4x6xf32, #tpu.memory_space<smem>>
    %336 = vector.broadcast %335 : f32 to vector<8x128xf32>
    %337 = arith.mulf %215, %336 : vector<8x128xf32>
    %338 = arith.addf %334, %337 : vector<8x128xf32>
    %c2_169 = arith.constant 2 : index
    %c5_170 = arith.constant 5 : index
    %339 = memref.load %arg4[%c2_169, %c5_170] : memref<4x6xf32, #tpu.memory_space<smem>>
    %340 = vector.broadcast %339 : f32 to vector<8x128xf32>
    %341 = arith.mulf %255, %340 : vector<8x128xf32>
    %342 = arith.addf %338, %341 : vector<8x128xf32>
    %c2_171 = arith.constant 2 : index
    %343 = memref.load %arg5[%c2_171] : memref<4xf32, #tpu.memory_space<smem>>
    %344 = vector.broadcast %343 : f32 to vector<8x128xf32>
    %345 = arith.addf %342, %344 : vector<8x128xf32>
    %cst_172 = arith.constant 0.000000e+00 : f32
    %346 = vector.broadcast %cst_172 : f32 to vector<8x128xf32>
    %347 = arith.subf %346, %345 : vector<8x128xf32>
    %348 = math.exp %347 : vector<8x128xf32>
    %cst_173 = arith.constant 1.000000e+00 : f32
    %349 = vector.broadcast %cst_173 : f32 to vector<8x128xf32>
    %350 = arith.addf %349, %348 : vector<8x128xf32>
    %351 = tpu.reciprocal %350 : vector<8x128xf32> -> vector<8x128xf32>
    %c3_174 = arith.constant 3 : index
    %c0_175 = arith.constant 0 : index
    %352 = memref.load %arg4[%c3_174, %c0_175] : memref<4x6xf32, #tpu.memory_space<smem>>
    %353 = vector.broadcast %352 : f32 to vector<8x128xf32>
    %354 = arith.mulf %55, %353 : vector<8x128xf32>
    %c3_176 = arith.constant 3 : index
    %c1_177 = arith.constant 1 : index
    %355 = memref.load %arg4[%c3_176, %c1_177] : memref<4x6xf32, #tpu.memory_space<smem>>
    %356 = vector.broadcast %355 : f32 to vector<8x128xf32>
    %357 = arith.mulf %95, %356 : vector<8x128xf32>
    %358 = arith.addf %354, %357 : vector<8x128xf32>
    %c3_178 = arith.constant 3 : index
    %c2_179 = arith.constant 2 : index
    %359 = memref.load %arg4[%c3_178, %c2_179] : memref<4x6xf32, #tpu.memory_space<smem>>
    %360 = vector.broadcast %359 : f32 to vector<8x128xf32>
    %361 = arith.mulf %135, %360 : vector<8x128xf32>
    %362 = arith.addf %358, %361 : vector<8x128xf32>
    %c3_180 = arith.constant 3 : index
    %c3_181 = arith.constant 3 : index
    %363 = memref.load %arg4[%c3_180, %c3_181] : memref<4x6xf32, #tpu.memory_space<smem>>
    %364 = vector.broadcast %363 : f32 to vector<8x128xf32>
    %365 = arith.mulf %175, %364 : vector<8x128xf32>
    %366 = arith.addf %362, %365 : vector<8x128xf32>
    %c3_182 = arith.constant 3 : index
    %c4_183 = arith.constant 4 : index
    %367 = memref.load %arg4[%c3_182, %c4_183] : memref<4x6xf32, #tpu.memory_space<smem>>
    %368 = vector.broadcast %367 : f32 to vector<8x128xf32>
    %369 = arith.mulf %215, %368 : vector<8x128xf32>
    %370 = arith.addf %366, %369 : vector<8x128xf32>
    %c3_184 = arith.constant 3 : index
    %c5_185 = arith.constant 5 : index
    %371 = memref.load %arg4[%c3_184, %c5_185] : memref<4x6xf32, #tpu.memory_space<smem>>
    %372 = vector.broadcast %371 : f32 to vector<8x128xf32>
    %373 = arith.mulf %255, %372 : vector<8x128xf32>
    %374 = arith.addf %370, %373 : vector<8x128xf32>
    %c3_186 = arith.constant 3 : index
    %375 = memref.load %arg5[%c3_186] : memref<4xf32, #tpu.memory_space<smem>>
    %376 = vector.broadcast %375 : f32 to vector<8x128xf32>
    %377 = arith.addf %374, %376 : vector<8x128xf32>
    %cst_187 = arith.constant 0.000000e+00 : f32
    %378 = vector.broadcast %cst_187 : f32 to vector<8x128xf32>
    %379 = arith.subf %378, %377 : vector<8x128xf32>
    %380 = math.exp %379 : vector<8x128xf32>
    %cst_188 = arith.constant 1.000000e+00 : f32
    %381 = vector.broadcast %cst_188 : f32 to vector<8x128xf32>
    %382 = arith.addf %381, %380 : vector<8x128xf32>
    %383 = tpu.reciprocal %382 : vector<8x128xf32> -> vector<8x128xf32>
    %c0_189 = arith.constant 0 : index
    %c0_190 = arith.constant 0 : index
    %384 = memref.load %arg6[%c0_189, %c0_190] : memref<1x4xf32, #tpu.memory_space<smem>>
    %385 = vector.broadcast %384 : f32 to vector<8x128xf32>
    %386 = arith.mulf %287, %385 : vector<8x128xf32>
    %c0_191 = arith.constant 0 : index
    %c1_192 = arith.constant 1 : index
    %387 = memref.load %arg6[%c0_191, %c1_192] : memref<1x4xf32, #tpu.memory_space<smem>>
    %388 = vector.broadcast %387 : f32 to vector<8x128xf32>
    %389 = arith.mulf %319, %388 : vector<8x128xf32>
    %390 = arith.addf %386, %389 : vector<8x128xf32>
    %c0_193 = arith.constant 0 : index
    %c2_194 = arith.constant 2 : index
    %391 = memref.load %arg6[%c0_193, %c2_194] : memref<1x4xf32, #tpu.memory_space<smem>>
    %392 = vector.broadcast %391 : f32 to vector<8x128xf32>
    %393 = arith.mulf %351, %392 : vector<8x128xf32>
    %394 = arith.addf %390, %393 : vector<8x128xf32>
    %c0_195 = arith.constant 0 : index
    %c3_196 = arith.constant 3 : index
    %395 = memref.load %arg6[%c0_195, %c3_196] : memref<1x4xf32, #tpu.memory_space<smem>>
    %396 = vector.broadcast %395 : f32 to vector<8x128xf32>
    %397 = arith.mulf %383, %396 : vector<8x128xf32>
    %398 = arith.addf %394, %397 : vector<8x128xf32>
    %c0_197 = arith.constant 0 : index
    %399 = memref.load %arg7[%c0_197] : memref<1xf32, #tpu.memory_space<smem>>
    %400 = vector.broadcast %399 : f32 to vector<8x128xf32>
    %401 = arith.addf %398, %400 : vector<8x128xf32>
    %cst_198 = arith.constant 0.000000e+00 : f32
    %402 = vector.broadcast %cst_198 : f32 to vector<8x128xf32>
    %403 = arith.subf %402, %401 : vector<8x128xf32>
    %404 = math.exp %403 : vector<8x128xf32>
    %cst_199 = arith.constant 1.000000e+00 : f32
    %405 = vector.broadcast %cst_199 : f32 to vector<8x128xf32>
    %406 = arith.addf %405, %404 : vector<8x128xf32>
    %407 = tpu.reciprocal %406 : vector<8x128xf32> -> vector<8x128xf32>
    %c0_200 = arith.constant 0 : index
    %c0_201 = arith.constant 0 : index
    %408 = vector.load %arg8[%c0_200, %c0_201] : memref<8x128xf32, #tpu.memory_space<vmem>>, vector<8x128xf32>
    tpu.vector_store %arg8[%c0_200, %c0_201], %407 {strides = array<i32>} : memref<8x128xf32, #tpu.memory_space<vmem>>, vector<8x128xf32>,
    return
  }
  func.func @transform_0(%arg0: i32) -> (i32, i32, i32) {
    %c0_i32 = arith.constant 0 : i32
    %c0_i32_0 = arith.constant 0 : i32
    %c0_i32_1 = arith.constant 0 : i32
    return %c0_i32, %arg0, %c0_i32_0 : i32, i32, i32
  }
  func.func @transform_1(%arg0: i32) -> (i32, i32) {
    %c0_i32 = arith.constant 0 : i32
    %c0_i32_0 = arith.constant 0 : i32
    %c0_i32_1 = arith.constant 0 : i32
    return %c0_i32, %c0_i32_0 : i32, i32
  }
  func.func @transform_2(%arg0: i32) -> i32 {
    %c0_i32 = arith.constant 0 : i32
    %c0_i32_0 = arith.constant 0 : i32
    return %c0_i32 : i32
  }
  func.func @transform_3(%arg0: i32) -> (i32, i32) {
    %c0_i32 = arith.constant 0 : i32
    %c0_i32_0 = arith.constant 0 : i32
    %c0_i32_1 = arith.constant 0 : i32
    return %c0_i32, %c0_i32_0 : i32, i32
  }
  func.func @transform_4(%arg0: i32) -> i32 {
    %c0_i32 = arith.constant 0 : i32
    %c0_i32_0 = arith.constant 0 : i32
    return %c0_i32 : i32
  }
  func.func @transform_5(%arg0: i32) -> (i32, i32) {
    %c0_i32 = arith.constant 0 : i32
    %c0_i32_0 = arith.constant 0 : i32
    %c0_i32_1 = arith.constant 0 : i32
    return %c0_i32, %c0_i32_0 : i32, i32
  }
  func.func @transform_6(%arg0: i32) -> i32 {
    %c0_i32 = arith.constant 0 : i32
    %c0_i32_0 = arith.constant 0 : i32
    return %c0_i32 : i32
  }
  func.func @transform_7(%arg0: i32) -> (i32, i32) {
    %c0_i32 = arith.constant 0 : i32
    %c0_i32_0 = arith.constant 0 : i32
    return %arg0, %c0_i32 : i32, i32
  }
}

</mosaic_0001>

<bundles_post_ra>
// kernel: tpu_custom_call.1
= control target key start
LH: loop header
LB: loop body
LE: loop exit
PB: predicated region body
PF: predicated region fallthrough
CT: control target
= control target key end

     0   :  { %s1833_s0 = inlined_call_operand.hbm [shape: f32[8,16,128], index: 0, kind: input, shape index: {}]   ;;  %s1834_s1 = inlined_call_operand.hbm [shape: f32[6,8], index: 1, kind: input, shape index: {}]   ;;  %s1835_s2 = inlined_call_operand.vmem [shape: f32[6], index: 2, kind: input, shape index: {}]   ;;  %s1836_s3 = inlined_call_operand.vmem [shape: f32[4,6], index: 3, kind: input, shape index: {}]   ;;  %s1837_s4 = inlined_call_operand.vmem [shape: f32[4], index: 4, kind: input, shape index: {}]   ;;  %s1838_s5 = inlined_call_operand.vmem [shape: f32[1,4], index: 5, kind: input, shape index: {}]   ;;  %s1839_s6 = inlined_call_operand.<no memory space> [shape: f32[1], index: 6, kind: input, shape index: {}]   ;;  %s1840_s7 = inlined_call_operand.hbm [shape: f32[16,128], index: 7, kind: output, shape index: {}]  }
   0x1   :  { %1845 = sst [smem:[#allocation22_spill]] %s1833_s0 }
   0x2   :  { %1846 = sst [smem:[#allocation23_spill]] %s1834_s1 }
   0x3   :  { %12 = sst [smem:[#allocation2]] %s1839_s6 }
   0x4   :  { %13 = vsyncpa [#allocation4], 0 }
   0x5   :  { %15 = vsyncpa [#allocation4 + $0x1], 0 }
   0x6   :  { %16 = vsyncpa [#allocation6], 0 }
   0x7   :  { %17 = vsyncpa [#allocation7], 0 }
   0x8   :  { %18 = vsyncpa [#allocation11], 0 }
   0x9   :  { %19 = vsyncpa [#allocation14], 0 }
   0xa   :  { %20 = vsyncpa [#allocation5], 0 }
   0xb   :  { %22 = vsyncpa [#allocation5 + $0x1], 0  ;;  %s1382_s26 = smov 0   ;;  %s1384_s27 = smov 0  }
   0xc   :  { %s1386_s28 = smov 0   ;;  %s1388_s29 = smov 0  }
   0xd LB: > { %s1403_s6 = sadd.s32 4294967295, %s1327_s29   ;;  %s894_s30 = sadd.s32 4294967294, %s1327_s29   ;;  %s1327_s29 = sphi %s1388_s29, %s1872_s29   ;;  %s1323_s28 = sphi %s1386_s28, %s1871_s28   ;;  %s1319_s27 = sphi %s1384_s27, %s1870_s27   ;;  %s1315_s26 = sphi %s1382_s26, %s1869_s26  }
   0xe   : > { %p48_p0 = scmp.ne.s32.totalorder %s1319_s27, %s1315_s26  ;;  %p1841_p1 = scmp.eq.s32.totalorder %s1403_s6, 0 }
   0xf   : > { %p204_p3 = scmp.eq.s32.totalorder %s894_s30, 1  ;;  %p895_p5 = scmp.ge.s32.totalorder %s1327_s29, 1 }
  0x10   : > { %p1412_p4 = por %p1841_p1, %p48_p0  ;;  %p211_p7 = scmp.lt.s32.totalorder %s1327_s29, 3 }
  0x11   : > { %p1417_p6 = por %p204_p3, %p48_p0  ;;  %s244_s12 = sshll.u32 %s1836_s3, 4  ;;  %s245_s12 = int_to_ptr.vmem [resolvable:$true] %s244_s12 }
  0x12   : > { %s1847_s8 = scalar_select %p1412_p4, 1, 0 }
  0x13   : > { %s1848_s9 = scalar_select %p1417_p6, 1, 0 }
  0x14   : > { %p1425_p8 = pnand %p895_p5, %p211_p7  ;;  %s233_s16 = sshll.u32 %s1835_s2, 4  ;;  %s234_s16 = int_to_ptr.vmem [resolvable:$true] %s233_s16 }
  0x15   : > { %s255_s20 = sshll.u32 %s1837_s4, 4  ;;  %s1148_s21 = scalar_lea.vmem %s245_s12, 64  ;;  %s1444_s20 = int_to_ptr.vmem [resolvable:$true] %s255_s20 }
  0x16   : > { %s1849_s13 = scalar_select %p1425_p8, 1, 0 }
  0x17   : > { %p1028_p10 = pneg %p1425_p8  ;;  %p1149_p12 = scmp.ne.s32.totalorder %s245_s12, %s1148_s21 }
  0x18   : > { %p1156_p5 = scmp.lt.s32.totalorder %s245_s12, %s245_s12  ;;  %p1157_p7 = scmp.lt.s32.totalorder %s1148_s21, %s1148_s21 }
  0x19   : > { %p1437_p11 = pnand %p1028_p10, %p1841_p1 }
  0x1a   : > { %p1158_p10 = por %p1157_p7, %p1156_p5 }
  0x1b   : > { %p1150_p13 = pneg %p1437_p11 }
  0x1d   : > { %p1151_p0 = pnand %p1150_p13, %p1149_p12 }
  0x1f   : > { %p1152_p3 = pneg %p1151_p0 }
  0x21   : > { %p1159_p9 = pnand %p1158_p10, %p1152_p3 }
  0x23   : > { %1162 = shalt.err (!%p1159_p9)
}
  0x24   : > { %s1329_s22 = smov [#allocation10]   ;;  %s1330_s23 = smov [#allocation8]  }
  0x25   : > { %1037 = dma.vmem_to_smem (!%p1437_p11), %s245_s12, 64, %s1329_s22, [#allocation11]  }
  0x26   : > { %s1851_s1 = sld [smem:[#allocation23_spill]]  ;;  %s1174_s30 = scalar_lea.vmem %s234_s16, 16 }
  0x27   : > { %p1175_p12 = scmp.ne.s32.totalorder %s234_s16, %s1174_s30  ;;  %p1182_p3 = scmp.lt.s32.totalorder %s234_s16, %s234_s16 }
  0x28   : > { %p1183_p9 = scmp.lt.s32.totalorder %s1174_s30, %s1174_s30 }
  0x29   : > { %p1177_p0 = pnand %p1175_p12, %p1150_p13 }
  0x2a   : > { %p1184_p7 = por %p1183_p9, %p1182_p3 }
  0x2b   : > { %p1178_p5 = pneg %p1177_p0 }
  0x2c   : > { %1031 = dma.hbm_to_smem (!%p1437_p11), %s1851_s1, 128, %s1330_s23, [#allocation6]  }
  0x2d   : > { %p1185_p10 = pnand %p1184_p7, %p1178_p5 }
  0x2f   : > { %1188 = shalt.err (!%p1185_p10)
}
  0x30   : > { %s1331_s10 = smov [#allocation9]   ;;  %s1189_s11 = scalar_lea.vmem %s1444_s20, 16 }
  0x31   : > { %1034 = dma.vmem_to_smem (!%p1437_p11), %s234_s16, 16, %s1331_s10, [#allocation7]  }
  0x32   : > { %p1190_p1 = scmp.ne.s32.totalorder %s1444_s20, %s1189_s11  ;;  %p1197_p0 = scmp.lt.s32.totalorder %s1444_s20, %s1444_s20 }
  0x33   : > { %p1198_p6 = scmp.lt.s32.totalorder %s1189_s11, %s1189_s11 }
  0x34   : > { %p1192_p2 = pnand %p1190_p1, %p1150_p13 }
  0x35   : > { %p1199_p3 = por %p1198_p6, %p1197_p0 }
  0x36   : > { %p1193_p12 = pneg %p1192_p2 }
  0x38   : > { %p1200_p5 = pnand %p1199_p3, %p1193_p12 }
  0x3a   : > { %1203 = shalt.err (!%p1200_p5)
}
  0x3b   : > { %s1332_s12 = smov [#allocation12]   ;;  %s266_s16 = sshll.u32 %s1838_s5, 4  ;;  %s267_s16 = int_to_ptr.vmem [resolvable:$true] %s266_s16 }
  0x3c   : > { %1040 = dma.vmem_to_smem (!%p1437_p11), %s1444_s20, 16, %s1332_s12, [#allocation11]  }
  0x3d   : > { %s1204_s18 = scalar_lea.vmem %s267_s16, 16  ;;  %p1212_p6 = scmp.lt.s32.totalorder %s267_s16, %s267_s16 }
  0x3e   : > { %p1205_p1 = scmp.ne.s32.totalorder %s267_s16, %s1204_s18  ;;  %p1213_p7 = scmp.lt.s32.totalorder %s1204_s18, %s1204_s18 }
  0x40   : > { %p1207_p2 = pnand %p1205_p1, %p1150_p13  ;;  %p1214_p10 = por %p1213_p7, %p1212_p6 }
  0x42   : > { %p1208_p9 = pneg %p1207_p2 }
  0x44   : > { %p1215_p12 = pnand %p1214_p10, %p1208_p9 }
  0x46   : > { %1218 = shalt.err (!%p1215_p12)
}
  0x47   : > { %s1333_s19 = smov [#allocation13]   ;;  %s1482_s20 = sadd.s32 1, %s1327_s29  }
  0x48   : > { %1043 = dma.vmem_to_smem (!%p1437_p11), %s267_s16, 16, %s1333_s19, [#allocation14]  }
  0x49   : > { %s32_s21 = ssub.s32 %s1327_s29, %s1482_s20  ;;  %s35_s22 = sadd.s32 1, %s1323_s28 }
  0x4a   : > { %p33_p13 = scmp.eq.s32.totalorder %s32_s21, 0  ;;  %p42_p0 = scmp.ne.s32.totalorder %s1323_s28, %s1319_s27 }
  0x4b   : > { %p43_p3 = scmp.eq.s32.totalorder %s1327_s29, 0  ;;  %p1057_p5 = scmp.lt.s32.totalorder %s1327_s29, 2 }
  0x4c   : > { %s1492_s17 = scalar_select %p33_p13, %s1323_s28, %s35_s22  }
  0x4d   : > { %p44_p1 = por %p43_p3, %p42_p0  ;;  %p1852_p2 = scmp.eq.s32.totalorder %s1403_s6, 1 }
  0x4e   : > { %s280_s24 = sand.u32 1, %s1323_s28   ;;  %s903_s25 = sshll.u32 %s1327_s29, 7 }
  0x4f   : > { %p1496_p9 = por %p1852_p2, %p42_p0  ;;  %s902_s30 = sshll.u32 %s280_s24, 6 }
  0x50   : > { %s1854_s0 = sld [smem:[#allocation22_spill]]  ;;  %s284_s14 = scalar_lea.vmem [#allocation3], %s902_s30 }
  0x51   : > { %s1853_s23 = scalar_select %p1496_p9, 1, 0 }
  0x52   : > { %s290_s15 = sshll.u32 %s284_s14, 4  ;;  %p1507_p11 = pnand %p1057_p5, %p44_p1  ;;  %s1511_s15 = int_to_ptr.vmem [resolvable:$true] %s290_s15 }
  0x53   : > { %s1513_s18 = scalar_lea.sflag [#allocation4], %s280_s24 }
  0x54   : > { %p1221_p7 = pneg %p1507_p11 }
  0x56   : > { %s1505_s12 = scalar_lea.hbm %s1854_s0, %s903_s25  ;;  %s1224_s25 = scalar_lea.hbm %s1854_s0, 2048 }
  0x57   : > { %s1219_s19 = scalar_lea.hbm %s1505_s12, 1024  ;;  %p1225_p13 = scmp.lt.s32.totalorder %s1505_s12, %s1854_s0 }
  0x58   : > { %p1220_p6 = scmp.ne.s32.totalorder %s1505_s12, %s1219_s19  ;;  %p1226_p0 = scmp.lt.s32.totalorder %s1224_s25, %s1219_s19 }
  0x5a   : > { %p1222_p10 = pnand %p1221_p7, %p1220_p6  ;;  %p1227_p3 = por %p1226_p0, %p1225_p13 }
  0x5c   : > { %p1223_p12 = pneg %p1222_p10 }
  0x5e   : > { %p1228_p5 = pnand %p1227_p3, %p1223_p12 }
  0x60   : > { %1231 = shalt.err (!%p1228_p5)
}
  0x61   : > { %s1232_s24 = scalar_lea.vmem %s1511_s15, 1024  ;;  %s1334_s11 = smov [#allocation3]  }
  0x62   : > { %p1233_p1 = scmp.ne.s32.totalorder %s1511_s15, %s1232_s24  ;;  %s1237_s14 = sshll.u32 %s1334_s11, 4  ;;  %s1238_s14 = int_to_ptr.vmem [resolvable:$false] %s1237_s14 }
  0x63   : > { %s1239_s21 = scalar_lea.vmem %s1238_s14, 2048  ;;  %p1240_p10 = scmp.lt.s32.totalorder %s1511_s15, %s1238_s14 }
  0x64   : > { %p1235_p2 = pnand %p1233_p1, %p1221_p7  ;;  %p1241_p9 = scmp.lt.s32.totalorder %s1239_s21, %s1232_s24 }
  0x66   : > { %p1236_p6 = pneg %p1235_p2  ;;  %p1242_p4 = por %p1241_p9, %p1240_p10 }
  0x68   : > { %p1243_p8 = pnand %p1242_p4, %p1236_p6 }
  0x6a   : > { %1246 = shalt.err (!%p1243_p8)
}
  0x6b   : > { %s1335_s19 = smov 256   ;;  %s1336_s22 = smov 128  }
  0x6c   : > { %s1337_s25 = smov 8   ;;  %p1856_p7 = scmp.ne.s32.totalorder %s1849_s13, 0 }
  0x6d   : > { %1047 = dma.hbm_to_vmem [thread:$0]  (!%p1507_p11), %s1505_s12, 1024, %s1511_s15, %s1513_s18, %s1335_s19, %s1336_s22, %s1337_s25  }
  0x6e   : > { %302 = sbr.rel (%p1856_p7) target bundleno = 334 (0x14e), region = 48  ;;  %s1537_s30 = sand.u32 (!%p1856_p7), 1, %s1319_s27  }
  0x6f   : > { %s905_s10 = sshll.u32 (!%p1856_p7), %s1537_s30, 6  ;;  %s305_s24 = scalar_lea.sflag (!%p1856_p7), [#allocation4], %s1537_s30 }
  0x70   : > { %s1541_s11 = scalar_lea.vmem (!%p1856_p7), [#allocation3], %s905_s10  ;;  %p1857_p4 = scmp.ne.s32.totalorder (!%p1856_p7), %s1847_s8, 0 }
  0x73   : > { %1290 = dma.done.wait (%p1857_p4), %s305_s24, 1024  }
  0x74   : > { %1292 = vsyncadd (%p1857_p4), %s305_s24, 4294966272  ;;  %p1858_p8 = scmp.eq.s32.totalorder %s1403_s6, 0 }
  0x76   : > { %1294 = dma.done.wait (%p1858_p8), [#allocation6], 128   ;;  %p1859_p9 = pmov %p1858_p8 }
  0x77   : > { %p1860_p11 = pmov %p1858_p8 }
  0x78   : > { %1296 = vsyncadd (%p1859_p9), [#allocation6], 4294967168 }
  0x79   : > { %1298 = dma.done.wait (%p1860_p11), [#allocation7], 16   ;;  %p1861_p12 = pmov %p1858_p8 }
  0x7a   : > { %p1862_p13 = pmov %p1858_p8 }
  0x7b   : > { %1300 = vsyncadd (%p1861_p12), [#allocation7], 4294967280 }
  0x7c   : > { %1302 = dma.done.wait (%p1862_p13), [#allocation11], 80   ;;  %p1863_p0 = pmov %p1858_p8 }
  0x7e   : > { %1304 = vsyncadd (%p1863_p0), [#allocation11], 4294967216  ;;  %p1864_p3 = pmov %p1863_p0 }
  0x7f   : > { %p1865_p5 = pmov %p1863_p0 }
  0x80   : > { %1306 = dma.done.wait (%p1864_p3), [#allocation14], 16  }
  0x81   : > { %1308 = vsyncadd (%p1865_p5), [#allocation14], 4294967280 }
  0x82   : > { %333 = sfence }
  0x83   : > { %s375_s8 = sld [smem:[#allocation8]]  ;;  %v1564_v0 = vld [vmem:[%s1541_s11] sm:$0xff]  ;;  %v1567_v1 = vld [vmem:[%s1541_s11 + $0x8] sm:$0xff]  ;;  %v1572_v2 = vld [vmem:[%s1541_s11 + $0x10] sm:$0xff]  ;;  %p1866_p2 = scmp.ne.s32.totalorder %s1853_s23, 0 }
  0x84   : > { %s919_s13 = sld [smem:[#allocation8 + $0x1]]  ;;  %v1577_v4 = vld [vmem:[%s1541_s11 + $0x18] sm:$0xff]  ;;  %v1586_v9 = vld [vmem:[%s1541_s11 + $0x20] sm:$0xff]  ;;  %v1592_v17 = vld [vmem:[%s1541_s11 + $0x28] sm:$0xff] }
  0x85   : > { %s920_s12 = sld [smem:[#allocation8 + $0x2]]  ;;  %v1604_v25 = vld [vmem:[%s1541_s11 + $0x30] sm:$0xff]  ;;  %v1615_v37 = vld [vmem:[%s1541_s11 + $0x38] sm:$0xff] }
  0x86   : > { %s921_s15 = sld [smem:[#allocation8 + $0x3]] }
  0x87   : > { %s922_s16 = sld [smem:[#allocation8 + $0x4]] }
  0x88   : > { %s1569_s18 = sld [smem:[#allocation8 + $0x5]] }
  0x89   : > { %v376_v3 = vstv %s375_s8  ;;  %s1574_s14 = sld [smem:[#allocation8 + $0x6]] }
  0x8a   : > { %v377_v5 = vmul.f32 %v376_v3, %v1564_v0  ;;  %v379_v6 = vstv %s919_s13  ;;  %s1580_s21 = sld [smem:[#allocation8 + $0x7]] }
  0x8b   : > { %v380_v7 = vmul.f32 %v1567_v1, %v379_v6  ;;  %v383_v8 = vstv %s920_s12  ;;  %s1583_s19 = sld [smem:[#allocation9]] }
  0x8c   : > { %v384_v10 = vmul.f32 %v1572_v2, %v383_v8  ;;  %v387_v11 = vstv %s921_s15  ;;  %s926_s22 = sld [smem:[#allocation8 + $0x80]] }
  0x8d   : > { %v381_v12 = vadd.f32 %v380_v7, %v377_v5  ;;  %v388_v13 = vmul.f32 %v1577_v4, %v387_v11  ;;  %v391_v14 = vstv %s922_s16  ;;  %s927_s25 = sld [smem:[#allocation8 + $0x81]] }
  0x8e   : > { %s928_s10 = sld [smem:[#allocation8 + $0x82]]  ;;  %v392_v16 = vmul.f32 %v1586_v9, %v391_v14  ;;  %v395_v18 = vstv %s1569_s18 }
  0x8f   : > { %v385_v15 = vadd.f32 %v384_v10, %v381_v12  ;;  %s929_s24 = sld [smem:[#allocation8 + $0x83]]  ;;  %v396_v22 = vmul.f32 %v1592_v17, %v395_v18  ;;  %v399_v26 = vstv %s1574_s14 }
  0x90   : > { %s930_s8 = sld [smem:[#allocation8 + $0x84]]  ;;  %v400_v35 = vmul.f32 %v1604_v25, %v399_v26  ;;  %v403_v38 = vstv %s1580_s21 }
  0x91   : > { %v389_v19 = vadd.f32 %v388_v13, %v385_v15  ;;  %s1595_s13 = sld [smem:[#allocation8 + $0x85]]  ;;  %v404_v45 = vmul.f32 %v1615_v37, %v403_v38  ;;  %v407_v3 = vstv %s1583_s19 }
  0x92   : > { %v415_v20 = vstv %s926_s22  ;;  %s1597_s12 = sld [smem:[#allocation8 + $0x86]] }
  0x93   : > { %v393_v21 = vadd.f32 %v392_v16, %v389_v19  ;;  %v416_v23 = vmul.f32 %v415_v20, %v1564_v0  ;;  %v418_v24 = vstv %s927_s25  ;;  %s1601_s15 = sld [smem:[#allocation8 + $0x87]] }
  0x94   : > { %v419_v27 = vmul.f32 %v1567_v1, %v418_v24  ;;  %v422_v28 = vstv %s928_s10  ;;  %s1608_s16 = sld [smem:[#allocation9 + $0x1]] }
  0x95   : > { %v423_v29 = vmul.f32 %v1572_v2, %v422_v28  ;;  %v426_v30 = vstv %s929_s24  ;;  %s935_s18 = sld [smem:[#allocation8 + $0x100]]  ;;  %v397_v34 = vadd.f32 %v396_v22, %v393_v21 }
  0x96   : > { %v420_v31 = vadd.f32 %v419_v27, %v416_v23  ;;  %v427_v32 = vmul.f32 %v1577_v4, %v426_v30  ;;  %v430_v33 = vstv %s930_s8  ;;  %s936_s22 = sld [smem:[#allocation8 + $0x101]] }
  0x97   : > { %v434_v36 = vstv %s1595_s13  ;;  %s937_s14 = sld [smem:[#allocation8 + $0x102]]  ;;  %v431_v40 = vmul.f32 %v1586_v9, %v430_v33  ;;  %v401_v44 = vadd.f32 %v400_v35, %v397_v34 }
  0x98   : > { %v424_v39 = vadd.f32 %v423_v29, %v420_v31  ;;  %v438_v41 = vstv %s1597_s12  ;;  %s938_s25 = sld [smem:[#allocation8 + $0x103]]  ;;  %v435_v43 = vmul.f32 %v1592_v17, %v434_v36 }
  0x99   : > { %s1620_s10 = sld [smem:[#allocation8 + $0x104]]  ;;  %v439_v46 = vmul.f32 %v1604_v25, %v438_v41  ;;  %v442_v49 = vstv %s1601_s15  ;;  %v405_v61 = vadd.f32 %v404_v45, %v401_v44 }
  0x9a   : > { %v428_v42 = vadd.f32 %v427_v32, %v424_v39  ;;  %s1623_s24 = sld [smem:[#allocation8 + $0x105]]  ;;  %v443_v57 = vmul.f32 %v1615_v37, %v442_v49  ;;  %v446_v14 = vstv %s1608_s16 }
  0x9b   : > { %v454_v47 = vstv %s935_s18  ;;  %s1627_s11 = sld [smem:[#allocation8 + $0x106]]  ;;  %v408_v13 = vadd.f32 %v407_v3, %v405_v61 }
  0x9c   : > { %v432_v48 = vadd.f32 %v431_v40, %v428_v42  ;;  %v455_v50 = vmul.f32 %v454_v47, %v1564_v0  ;;  %v457_v51 = vstv %s936_s22  ;;  %s1631_s21 = sld [smem:[#allocation8 + $0x107]] }
  0x9d   : > { %v458_v52 = vmul.f32 %v1567_v1, %v457_v51  ;;  %v461_v53 = vstv %s937_s14  ;;  %s1634_s8 = sld [smem:[#allocation9 + $0x2]]  ;;  %v409_v32 = vsub.f32 0.0, %v408_v13 }
  0x9e   : > { %v436_v54 = vadd.f32 %v435_v43, %v432_v48  ;;  %v462_v55 = vmul.f32 %v1572_v2, %v461_v53  ;;  %v465_v56 = vstv %s938_s25  ;;  %s944_s13 = sld [smem:[#allocation8 + $0x180]] }
  0x9f   : > { %v459_v58 = vadd.f32 %v458_v52, %v455_v50  ;;  %v466_v59 = vmul.f32 %v1577_v4, %v465_v56  ;;  %v469_v60 = vstv %s1620_s10  ;;  %s945_s12 = sld [smem:[#allocation8 + $0x181]]  ;;  %v410_v44 = vmul.f32 1.442695, %v409_v32 }
  0xa0   : > { %v440_v62 = vadd.f32 %v439_v46, %v436_v54  ;;  %v473_v63 = vstv %s1623_s24  ;;  %s946_s15 = sld [smem:[#allocation8 + $0x182]]  ;;  %v470_v6 = vmul.f32 %v1586_v9, %v469_v60 }
  0xa1   : > { %v463_v5 = vadd.f32 %v462_v55, %v459_v58  ;;  %s947_s18 = sld [smem:[#allocation8 + $0x183]]  ;;  %v477_v7 = vstv %s1627_s11  ;;  %v474_v11 = vmul.f32 %v1592_v17, %v473_v63  ;;  %1104 = vpow2.f32 %v410_v44 }
  0xa2   : > { %s1644_s22 = sld [smem:[#allocation8 + $0x184]]  ;;  %v444_v8 = vadd.f32 %v443_v57, %v440_v62  ;;  %v481_v12 = vstv %s1631_s21  ;;  %v478_v18 = vmul.f32 %v1604_v25, %v477_v7 }
  0xa3   : > { %v467_v10 = vadd.f32 %v466_v59, %v463_v5  ;;  %s1648_s14 = sld [smem:[#allocation8 + $0x185]]  ;;  %v482_v21 = vmul.f32 %v1615_v37, %v481_v12  ;;  %v485_v35 = vstv %s1634_s8 }
  0xa4   : > { %v493_v15 = vstv %s944_s13  ;;  %s1651_s25 = sld [smem:[#allocation8 + $0x186]]  ;;  %v447_v24 = vadd.f32 %v446_v14, %v444_v8 }
  0xa5   : > { %v471_v16 = vadd.f32 %v470_v6, %v467_v10  ;;  %v494_v19 = vmul.f32 %v493_v15, %v1564_v0  ;;  %v496_v20 = vstv %s945_s12  ;;  %s1655_s19 = sld [smem:[#allocation8 + $0x187]] }
  0xa6   : > { %v497_v22 = vmul.f32 %v1567_v1, %v496_v20  ;;  %v500_v23 = vstv %s946_s15  ;;  %s1659_s16 = sld [smem:[#allocation9 + $0x3]]  ;;  %v448_v39 = vsub.f32 0.0, %v447_v24 }
  0xa7   : > { %v475_v26 = vadd.f32 %v474_v11, %v471_v16  ;;  %v501_v27 = vmul.f32 %v1572_v2, %v500_v23  ;;  %v504_v28 = vstv %s947_s18  ;;  %s953_s10 = sld [smem:[#allocation8 + $0x200]] }
  0xa8   : > { %v498_v29 = vadd.f32 %v497_v22, %v494_v19  ;;  %v505_v30 = vmul.f32 %v1577_v4, %v504_v28  ;;  %v508_v31 = vstv %s1644_s22  ;;  %s954_s24 = sld [smem:[#allocation8 + $0x201]]  ;;  %v449_v52 = vmul.f32 1.442695, %v448_v39 }
  0xa9   : > { %v479_v33 = vadd.f32 %v478_v18, %v475_v26  ;;  %v512_v34 = vstv %s1648_s14  ;;  %s955_s11 = sld [smem:[#allocation8 + $0x202]]  ;;  %v509_v38 = vmul.f32 %v1586_v9, %v508_v31 }
  0xaa   : > { %v502_v36 = vadd.f32 %v501_v27, %v498_v29  ;;  %s956_s21 = sld [smem:[#allocation8 + $0x203]]  ;;  %v516_v41 = vstv %s1651_s25  ;;  %v513_v43 = vmul.f32 %v1592_v17, %v512_v34  ;;  %1106 = vpow2.f32 %v449_v52 }
  0xab   : > { %v483_v40 = vadd.f32 %v482_v21, %v479_v33  ;;  %s1668_s13 = sld [smem:[#allocation8 + $0x204]]  ;;  %v520_v46 = vstv %s1655_s19  ;;  %v517_v49 = vmul.f32 %v1604_v25, %v516_v41 }
  0xac   : > { %v506_v42 = vadd.f32 %v505_v30, %v502_v36  ;;  %s1671_s12 = sld [smem:[#allocation8 + $0x205]]  ;;  %v521_v57 = vmul.f32 %v1615_v37, %v520_v46  ;;  %v524_v6 = vstv %s1659_s16 }
  0xad   : > { %v486_v45 = vadd.f32 %v485_v35, %v483_v40  ;;  %v532_v47 = vstv %s953_s10  ;;  %s1674_s15 = sld [smem:[#allocation8 + $0x206]] }
  0xae   : > { %v510_v48 = vadd.f32 %v509_v38, %v506_v42  ;;  %v533_v50 = vmul.f32 %v532_v47, %v1564_v0  ;;  %v535_v51 = vstv %s954_s24  ;;  %s1678_s8 = sld [smem:[#allocation8 + $0x207]]  ;;  %v1105_v40 = vpop.eup %1104 }
  0xaf   : > { %v487_v53 = vsub.f32 0.0, %v486_v45  ;;  %v536_v54 = vmul.f32 %v1567_v1, %v535_v51  ;;  %v539_v55 = vstv %s955_s11  ;;  %s1681_s18 = sld [smem:[#allocation9 + $0x4]]  ;;  %v412_v47 = vadd.f32 1.0, %v1105_v40 }
  0xb0   : > { %v514_v56 = vadd.f32 %v513_v43, %v510_v48  ;;  %v540_v58 = vmul.f32 %v1572_v2, %v539_v55  ;;  %v543_v59 = vstv %s956_s21  ;;  %s962_s22 = sld [smem:[#allocation8 + $0x280]] }
  0xb1   : > { %v537_v60 = vadd.f32 %v536_v54, %v533_v50  ;;  %v544_v61 = vmul.f32 %v1577_v4, %v543_v59  ;;  %s963_s14 = sld [smem:[#allocation8 + $0x281]]  ;;  %v488_v62 = vmul.f32 1.442695, %v487_v53  ;;  %v547_v3 = vstv %s1668_s13 }
  0xb2   : > { %v518_v63 = vadd.f32 %v517_v49, %v514_v56  ;;  %v551_v5 = vstv %s1671_s12  ;;  %s964_s25 = sld [smem:[#allocation8 + $0x282]]  ;;  %v548_v8 = vmul.f32 %v1586_v9, %v547_v3 }
  0xb3   : > { %v541_v7 = vadd.f32 %v540_v58, %v537_v60  ;;  %s965_s19 = sld [smem:[#allocation8 + $0x283]]  ;;  %v555_v11 = vstv %s1674_s15  ;;  %v552_v13 = vmul.f32 %v1592_v17, %v551_v5  ;;  %1108 = vpow2.f32 %v488_v62 }
  0xb4   : > { %v522_v10 = vadd.f32 %v521_v57, %v518_v63  ;;  %s966_s10 = sld [smem:[#allocation8 + $0x284]]  ;;  %v559_v15 = vstv %s1678_s8  ;;  %v556_v19 = vmul.f32 %v1604_v25, %v555_v11 }
  0xb5   : > { %v545_v12 = vadd.f32 %v544_v61, %v541_v7  ;;  %s1692_s24 = sld [smem:[#allocation8 + $0x285]]  ;;  %v560_v27 = vmul.f32 %v1615_v37, %v559_v15  ;;  %v563_v35 = vstv %s1681_s18 }
  0xb6   : > { %v525_v14 = vadd.f32 %v524_v6, %v522_v10  ;;  %v571_v16 = vstv %s962_s22  ;;  %s1695_s11 = sld [smem:[#allocation8 + $0x286]] }
  0xb7   : > { %v549_v18 = vadd.f32 %v548_v8, %v545_v12  ;;  %v572_v20 = vmul.f32 %v571_v16, %v1564_v0  ;;  %v574_v21 = vstv %s963_s14  ;;  %s1699_s16 = sld [smem:[#allocation8 + $0x287]]  ;;  %v1107_v44 = vpop.eup %1106 }
  0xb8   : > { %v526_v22 = vsub.f32 0.0, %v525_v14  ;;  %v575_v23 = vmul.f32 %v1567_v1, %v574_v21  ;;  %v578_v24 = vstv %s964_s25  ;;  %s970_s21 = sld [smem:[#allocation9 + $0x5]] }
  0xb9   : > { %v553_v26 = vadd.f32 %v552_v13, %v549_v18  ;;  %v579_v28 = vmul.f32 %v1572_v2, %v578_v24  ;;  %v582_v29 = vstv %s965_s19  ;;  %s1713_s13 = sld [smem:[#allocation10]] }
  0xba   : > { %v527_v30 = vmul.f32 1.442695, %v526_v22  ;;  %v576_v31 = vadd.f32 %v575_v23, %v572_v20  ;;  %v583_v0 = vmul.f32 %v1577_v4, %v582_v29  ;;  %v586_v33 = vstv %s966_s10  ;;  %s1715_s12 = sld [smem:[#allocation10 + $0x1]] }
  0xbb   : > { %v557_v32 = vadd.f32 %v556_v19, %v553_v26  ;;  %v590_v34 = vstv %s1692_s24  ;;  %v587_v1 = vmul.f32 %v1586_v9, %v586_v33  ;;  %v451_v9 = vadd.f32 1.0, %v1107_v44  ;;  %s1717_s15 = sld [smem:[#allocation10 + $0x2]] }
  0xbc   : > { %1110 = vpow2.f32 %v527_v30  ;;  %v580_v36 = vadd.f32 %v579_v28, %v576_v31  ;;  %v594_v39 = vstv %s1695_s11  ;;  %v591_v2 = vmul.f32 %v1592_v17, %v590_v34  ;;  %s1719_s8 = sld [smem:[#allocation10 + $0x80]] }
  0xbd   : > { %v561_v38 = vadd.f32 %v560_v27, %v557_v32  ;;  %v598_v43 = vstv %s1699_s16  ;;  %v595_v4 = vmul.f32 %v1604_v25, %v594_v39  ;;  %s1721_s18 = sld [smem:[#allocation10 + $0x81]] }
  0xbe   : > { %v584_v41 = vadd.f32 %v583_v0, %v580_v36  ;;  %v599_v49 = vmul.f32 %v1615_v37, %v598_v43  ;;  %v602_v53 = vstv %s970_s21  ;;  %s1723_s22 = sld [smem:[#allocation10 + $0x100]] }
  0xbf   : > { %v564_v42 = vadd.f32 %v563_v35, %v561_v38  ;;  %s1725_s14 = sld [smem:[#allocation10 + $0x101]]  ;;  %v610_v62 = vstv %s1713_s13 }
  0xc0   : > { %v588_v45 = vadd.f32 %v587_v1, %v584_v41  ;;  %v1109_v50 = vpop.eup %1108  ;;  %s1727_s25 = sld [smem:[#allocation10 + $0x180]]  ;;  %v613_v63 = vstv %s1715_s12 }
  0xc1   : > { %v565_v46 = vsub.f32 0.0, %v564_v42  ;;  %v490_v17 = vadd.f32 1.0, %v1109_v50  ;;  %s1729_s19 = sld [smem:[#allocation10 + $0x181]]  ;;  %v617_v16 = vstv %s1717_s15 }
  0xc2   : > { %v592_v48 = vadd.f32 %v591_v2, %v588_v45  ;;  %s1731_s10 = sld [smem:[#allocation10 + $0x82]]  ;;  %v641_v3 = vstv %s1719_s8 }
  0xc3   : > { %v566_v51 = vmul.f32 1.442695, %v565_v46  ;;  %s1733_s24 = sld [smem:[#allocation10 + $0x102]]  ;;  %v644_v5 = vstv %s1721_s18 }
  0xc4   : > { %v596_v52 = vadd.f32 %v595_v4, %v592_v48  ;;  %s1735_s11 = sld [smem:[#allocation10 + $0x182]]  ;;  %v672_v6 = vstv %s1723_s22 }
  0xc5   : > { %1112 = vpow2.f32 %v566_v51  ;;  %s1737_s16 = sld [smem:[#allocation10 + $0x3]]  ;;  %v675_v7 = vstv %s1725_s14 }
  0xc6   : > { %1114 = vrcp.f32 %v412_v47  ;;  %v600_v54 = vadd.f32 %v599_v49, %v596_v52  ;;  %s1743_s21 = sld [smem:[#allocation10 + $0x83]]  ;;  %v703_v8 = vstv %s1727_s25 }
  0xc7   : > { %1116 = vrcp.f32 %v451_v9  ;;  %s1747_s0 = sld [smem:[#allocation10 + $0x103]]  ;;  %v706_v10 = vstv %s1729_s19 }
  0xc8   : > { %v603_v55 = vadd.f32 %v602_v53, %v600_v54  ;;  %1118 = vrcp.f32 %v490_v17  ;;  %s1751_s1 = sld [smem:[#allocation10 + $0x183]]  ;;  %v648_v20 = vstv %s1731_s10 }
  0xc9   : > { %v1111_v25 = vpop.eup %1110  ;;  %s1754_s13 = sld [smem:[#allocation10 + $0x4]]  ;;  %v679_v21 = vstv %s1733_s24 }
  0xca   : > { %v604_v56 = vsub.f32 0.0, %v603_v55  ;;  %v529_v37 = vadd.f32 1.0, %v1111_v25  ;;  %s1757_s12 = sld [smem:[#allocation10 + $0x84]]  ;;  %v710_v24 = vstv %s1735_s11 }
  0xcb   : > { %s1760_s8 = sld [smem:[#allocation10 + $0x104]]  ;;  %v621_v34 = vstv %s1737_s16 }
  0xcc   : > { %v605_v57 = vmul.f32 1.442695, %v604_v56  ;;  %s1763_s15 = sld [smem:[#allocation10 + $0x184]]  ;;  %v652_v1 = vstv %s1743_s21 }
  0xcd   : > { %s1766_s18 = sld [smem:[#allocation10 + $0x5]]  ;;  %v683_v38 = vstv %s1747_s0 }
  0xce   : > { %1120 = vpow2.f32 %v605_v57  ;;  %v714_v39 = vstv %s1751_s1  ;;  %s1771_s22 = sld [smem:[#allocation10 + $0x85]] }
  0xcf   : > { %1122 = vrcp.f32 %v529_v37  ;;  %s1773_s14 = sld [smem:[#allocation10 + $0x105]]  ;;  %v625_v47 = vstv %s1754_s13 }
  0xd0   : > { %s995_s25 = sld [smem:[#allocation10 + $0x185]]  ;;  %v656_v48 = vstv %s1757_s12  ;;  %s911_s12 = sshll.u32 %s1537_s30, 3 }
  0xd1   : > { %s1775_s19 = sld [smem:[#allocation12]]  ;;  %v687_v49 = vstv %s1760_s8  ;;  %s1001_s8 = sshll.u32 %s1403_s6, 7 }
  0xd2   : > { %v1113_v58 = vpop.eup %1112  ;;  %s1779_s0 = sld [smem:[#allocation12 + $0x1]]  ;;  %v718_v50 = vstv %s1763_s15  ;;  %s359_s15 = scalar_lea.vmem [#allocation15], %s911_s12 }
  0xd3   : > { %v1115_v59 = vpop.eup %1114  ;;  %v568_v60 = vadd.f32 1.0, %v1113_v58  ;;  %s1783_s1 = sld [smem:[#allocation12 + $0x2]]  ;;  %v629_v56 = vstv %s1766_s18  ;;  %s771_s18 = sshll.u32 %s359_s15, 4  ;;  %s772_s18 = int_to_ptr.vmem [resolvable:$true] %s771_s18 }
  0xd4   : > { %v1117_v61 = vpop.eup %1116  ;;  %v611_v11 = vmul.f32 %v1115_v59, %v610_v62  ;;  %v642_v13 = vmul.f32 %v1115_v59, %v641_v3  ;;  %v673_v18 = vmul.f32 %v1115_v59, %v672_v6  ;;  %v704_v22 = vmul.f32 %v1115_v59, %v703_v8  ;;  %s996_s10 = sld [smem:[#allocation12 + $0x3]] }
  0xd5   : > { %1124 = vrcp.f32 %v568_v60  ;;  %v614_v12 = vmul.f32 %v1117_v61, %v613_v63  ;;  %v645_v14 = vmul.f32 %v1117_v61, %v644_v5  ;;  %v1119_v15 = vpop.eup %1118  ;;  %v676_v19 = vmul.f32 %v1117_v61, %v675_v7  ;;  %s733_s24 = sld [smem:[#allocation13]] }
  0xd6   : > { %v707_v23 = vmul.f32 %v1117_v61, %v706_v10  ;;  %v618_v28 = vmul.f32 %v1119_v15, %v617_v16  ;;  %v649_v31 = vmul.f32 %v1119_v15, %v648_v20  ;;  %v680_v32 = vmul.f32 %v1119_v15, %v679_v21  ;;  %s997_s11 = sld [smem:[#allocation13 + $0x1]] }
  0xd7   : > { %v615_v27 = vadd.f32 %v614_v12, %v611_v11  ;;  %v646_v29 = vadd.f32 %v645_v14, %v642_v13  ;;  %v677_v0 = vadd.f32 %v676_v19, %v673_v18  ;;  %v711_v36 = vmul.f32 %v1119_v15, %v710_v24  ;;  %s998_s16 = sld [smem:[#allocation13 + $0x2]] }
  0xd8   : > { %v708_v35 = vadd.f32 %v707_v23, %v704_v22  ;;  %v660_v37 = vstv %s1771_s22  ;;  %v691_v57 = vstv %s1773_s14  ;;  %v722_v58 = vstv %s995_s25  ;;  %s999_s21 = sld [smem:[#allocation13 + $0x3]]  ;;  %s1796_s25 = scalar_lea.hbm %s1840_s7, %s1001_s8 }
  0xd9   : > { %v619_v40 = vadd.f32 %v618_v28, %v615_v27  ;;  %v650_v2 = vadd.f32 %v649_v31, %v646_v29  ;;  %v681_v42 = vadd.f32 %v680_v32, %v677_v0  ;;  %v633_v8 = vstv %s1775_s19  ;;  %s748_s13 = sld [smem:[#allocation2]]  ;;  %s758_s19 = scalar_lea.sflag [#allocation5], %s1537_s30 }
  0xda   : > { %v712_v45 = vadd.f32 %v711_v36, %v708_v35  ;;  %v664_v10 = vstv %s1779_s0  ;;  %v695_v11 = vstv %s1783_s1  ;;  %v726_v12 = vstv %s996_s10  ;;  %s1247_s0 = scalar_lea.vmem %s772_s18, 128  ;;  %s1338_s1 = smov [#allocation15]  }
  0xdb   : > { %v1121_v26 = vpop.eup %1120  ;;  %p1248_p1 = scmp.ne.s32.totalorder %s772_s18, %s1247_s0  ;;  %s1251_s10 = sshll.u32 %s1338_s1, 4  ;;  %s1252_s10 = int_to_ptr.vmem [resolvable:$false] %s1251_s10 }
  0xdc   : > { %v607_v30 = vadd.f32 1.0, %v1121_v26  ;;  %v1123_v33 = vpop.eup %1122  ;;  %s1253_s6 = scalar_lea.vmem %s1252_s10, 256  ;;  %p1254_p7 = scmp.lt.s32.totalorder %s772_s18, %s1252_s10 }
  0xdd   : > { %v622_v41 = vmul.f32 %v1123_v33, %v621_v34  ;;  %v653_v43 = vmul.f32 %v1123_v33, %v652_v1  ;;  %v684_v44 = vmul.f32 %v1123_v33, %v683_v38  ;;  %v715_v4 = vmul.f32 %v1123_v33, %v714_v39  ;;  %p1249_p6 = pnand %p1248_p1, %p1866_p2  ;;  %p1255_p4 = scmp.lt.s32.totalorder %s1253_s6, %s1247_s0 }
  0xde   : > { %1126 = vrcp.f32 %v607_v30  ;;  %v734_v38 = vstv %s733_s24  ;;  %v737_v39 = vstv %s997_s11 }
  0xdf   : > { %v623_v9 = vadd.f32 %v622_v41, %v619_v40  ;;  %v654_v51 = vadd.f32 %v653_v43, %v650_v2  ;;  %v685_v52 = vadd.f32 %v684_v44, %v681_v42  ;;  %v716_v53 = vadd.f32 %v715_v4, %v712_v45  ;;  %p1250_p10 = pneg %p1249_p6  ;;  %p1256_p8 = por %p1255_p4, %p1254_p7 }
  0xe0   : > { %v741_v41 = vstv %s998_s16  ;;  %v745_v43 = vstv %s999_s21 }
  0xe1   : > { %p1257_p9 = pnand %p1256_p8, %p1250_p10 }
  0xe2   : > { %v1125_v46 = vpop.eup %1124 }
  0xe3   : > { %v626_v54 = vmul.f32 %v1125_v46, %v625_v47  ;;  %v657_v17 = vmul.f32 %v1125_v46, %v656_v48  ;;  %v688_v55 = vmul.f32 %v1125_v46, %v687_v49  ;;  %v719_v25 = vmul.f32 %v1125_v46, %v718_v50 }
  0xe4   : > { %v749_v50 = vstv %s748_s13 }
  0xe5   : > { %v627_v59 = vadd.f32 %v626_v54, %v623_v9  ;;  %v658_v60 = vadd.f32 %v657_v17, %v654_v51  ;;  %v689_v61 = vadd.f32 %v688_v55, %v685_v52  ;;  %v720_v62 = vadd.f32 %v719_v25, %v716_v53 }
  0xeb   : > { %v1127_v63 = vpop.eup %1126 }
  0xec   : > { %v630_v3 = vmul.f32 %v1127_v63, %v629_v56  ;;  %v661_v5 = vmul.f32 %v1127_v63, %v660_v37  ;;  %v692_v6 = vmul.f32 %v1127_v63, %v691_v57  ;;  %v723_v7 = vmul.f32 %v1127_v63, %v722_v58 }
  0xee   : > { %v631_v13 = vadd.f32 %v630_v3, %v627_v59  ;;  %v662_v14 = vadd.f32 %v661_v5, %v658_v60  ;;  %v693_v15 = vadd.f32 %v692_v6, %v689_v61  ;;  %v724_v16 = vadd.f32 %v723_v7, %v720_v62 }
  0xf0   : > { %v634_v18 = vadd.f32 %v633_v8, %v631_v13  ;;  %v665_v19 = vadd.f32 %v664_v10, %v662_v14  ;;  %v696_v20 = vadd.f32 %v695_v11, %v693_v15  ;;  %v727_v21 = vadd.f32 %v726_v12, %v724_v16 }
  0xf2   : > { %v635_v22 = vsub.f32 0.0, %v634_v18  ;;  %v666_v23 = vsub.f32 0.0, %v665_v19  ;;  %v697_v24 = vsub.f32 0.0, %v696_v20  ;;  %v728_v26 = vsub.f32 0.0, %v727_v21 }
  0xf4   : > { %v636_v27 = vmul.f32 1.442695, %v635_v22  ;;  %v667_v28 = vmul.f32 1.442695, %v666_v23  ;;  %v698_v29 = vmul.f32 1.442695, %v697_v24 }
  0xf5   : > { %v729_v30 = vmul.f32 1.442695, %v728_v26 }
  0xf6   : > { %1128 = vpow2.f32 %v636_v27 }
  0xf7   : > { %1130 = vpow2.f32 %v667_v28 }
  0xf8   : > { %1132 = vpow2.f32 %v698_v29 }
  0xf9   : > { %1134 = vpow2.f32 %v729_v30 }
 0x103   : > { %v1129_v31 = vpop.eup %1128 }
 0x104   : > { %v1131_v0 = vpop.eup %1130  ;;  %v638_v32 = vadd.f32 1.0, %v1129_v31 }
 0x105   : > { %v1133_v33 = vpop.eup %1132  ;;  %v669_v34 = vadd.f32 1.0, %v1131_v0 }
 0x106   : > { %v1135_v35 = vpop.eup %1134  ;;  %1136 = vrcp.f32 %v638_v32  ;;  %v700_v36 = vadd.f32 1.0, %v1133_v33 }
 0x107   : > { %1138 = vrcp.f32 %v669_v34  ;;  %v731_v1 = vadd.f32 1.0, %v1135_v35 }
 0x108   : > { %1140 = vrcp.f32 %v700_v36 }
 0x109   : > { %1142 = vrcp.f32 %v731_v1 }
 0x113   : > { %v1137_v40 = vpop.eup %1136 }
 0x114   : > { %v1139_v2 = vpop.eup %1138  ;;  %v735_v42 = vmul.f32 %v1137_v40, %v734_v38 }
 0x115   : > { %v1141_v44 = vpop.eup %1140  ;;  %v738_v45 = vmul.f32 %v1139_v2, %v737_v39 }
 0x116   : > { %v1143_v4 = vpop.eup %1142  ;;  %v742_v46 = vmul.f32 %v1141_v44, %v741_v41 }
 0x117   : > { %v739_v47 = vadd.f32 %v738_v45, %v735_v42  ;;  %v746_v48 = vmul.f32 %v1143_v4, %v745_v43 }
 0x119   : > { %v743_v49 = vadd.f32 %v742_v46, %v739_v47 }
 0x11b   : > { %v747_v9 = vadd.f32 %v746_v48, %v743_v49 }
 0x11d   : > { %v750_v51 = vadd.f32 %v749_v50, %v747_v9 }
 0x11f   : > { %v751_v52 = vsub.f32 0.0, %v750_v51 }
 0x121   : > { %v752_v53 = vmul.f32 1.442695, %v751_v52 }
 0x123   : > { %1144 = vpow2.f32 %v752_v53 }
 0x130   : > { %v1145_v54 = vpop.eup %1144 }
 0x131   : > { %v754_v17 = vadd.f32 1.0, %v1145_v54 }
 0x133   : > { %1146 = vrcp.f32 %v754_v17 }
 0x140   : > { %v1147_v55 = vpop.eup %1146 }
 0x141   : > { %756 = vst [vmem:[%s359_s15] sm:$0xff] %v1147_v55 }
 0x142   : > { %1260 = shalt.err (!%p1257_p9)
}
 0x143   : > { %s1261_s24 = scalar_lea.hbm %s1796_s25, 128  ;;  %s1265_s16 = scalar_lea.hbm %s1840_s7, 256 }
 0x144   : > { %p1262_p11 = scmp.ne.s32.totalorder %s1796_s25, %s1261_s24  ;;  %p1266_p0 = scmp.lt.s32.totalorder %s1796_s25, %s1840_s7 }
 0x145   : > { %p1267_p3 = scmp.lt.s32.totalorder %s1265_s16, %s1261_s24 }
 0x146   : > { %p1263_p12 = pnand %p1262_p11, %p1866_p2 }
 0x147   : > { %p1268_p5 = por %p1267_p3, %p1266_p0 }
 0x148   : > { %p1264_p13 = pneg %p1263_p12 }
 0x14a   : > { %p1269_p1 = pnand %p1268_p5, %p1264_p13 }
 0x14c   : > { %1272 = shalt.err (!%p1269_p1)
}
 0x14d   : > { %1026 = dma.vmem_to_hbm [thread:$0]  (%p1866_p2), %s772_s18, 128, %s1796_s25, %s758_s19  }
 0x14e PF: > { %s783_s12 = sand.u32 1, %s1315_s26   ;;  %p1867_p6 = scmp.ne.s32.totalorder %s1848_s9, 0 }
 0x14f   : > { %p1868_p10 = scmp.ge.s32.totalorder %s1327_s29, 2  ;;  %s784_s8 = scalar_lea.sflag [#allocation5], %s783_s12 }
 0x151   : > { %p1049_p7 = pnand %p1868_p10, %p1867_p6 }
 0x153   : > { %p1050_p4 = pneg %p1049_p7 }
 0x155   : > { %1310 = dma.done.wait (%p1050_p4), %s784_s8, 128  }
 0x156   : > { %1312 = vsyncadd (%p1050_p4), %s784_s8, 4294967168  ;;  %p25_p8 = scmp.ge.s32.totalorder %s1482_s20, 4   ;;  %s1869_s26 = smov %s1319_s27 }
 0x157   : > { %s1870_s27 = smov %s1323_s28  ;;  %s1871_s28 = smov %s1492_s17 }
 0x158   : > { %s1872_s29 = smov %s1482_s20  ;;  %27 = sbr.rel (!%p25_p8) target bundleno = 13 (0xd), region = 122 }
 0x15d   :  { %789 = vsyncpa [#allocation4], 1 }
 0x15e   :  { %791 = vsyncpa [#allocation4 + $0x1], 1 }
 0x15f   :  { %792 = vsyncpa [#allocation5], 1 }
 0x160   :  { %794 = vsyncpa [#allocation5 + $0x1], 1 }
 0x161   :  { %795 = vsyncpa [#allocation6], 1 }
 0x162   :  { %797 = vsyncpa [#allocation6 + $0x1], 1 }
 0x163   :  { %798 = vsyncpa [#allocation7], 1 }
 0x164   :  { %800 = vsyncpa [#allocation7 + $0x1], 1 }
 0x165   :  { %801 = vsyncpa [#allocation11], 1 }
 0x166   :  { %802 = vsyncpa [#allocation14], 1 }

</bundles_post_ra>
